<compile_context>
chip_gen: v5e
topology: v5e:2x2
jax: 0.10.0
libtpu: 0.0.40
codegen_flags: <defaults>
</compile_context>

<pallas_src>
import functools

import jax
import jax.numpy as jnp
from jax.experimental import pallas as pl
from jax.experimental.pallas import tpu as pltpu

TIME_STEPS = 52
CHANNELS = 64
HIDDEN = 50


# ---------------------------------------------------------------------------
# Fused forward-pass kernel (one grid step = one batch block, fully VMEM-resident)
# ---------------------------------------------------------------------------
def _fused_cnn_kernel(num_conv, ksize, pad, pool_window, hidden,
                      bias_row, w0_row, fc1b_row, fc2w_row, fc2b_row, *refs):
    """refs = (x, conv_w_stack[1..n-1], fc1_w, pack,   # inputs
               out,                                    # output
               flat)                                   # VMEM scratch
    """
    x_ref = refs[0]
    conv_w_refs = refs[1:num_conv]                 # (K, Cin, Cout) stacks, layers 1..
    fc1_w_ref, pack_ref, o_ref, flat_ref = refs[num_conv:]

    bsz = x_ref.shape[0]

    # ---- conv stack -------------------------------------------------------
    # `act` carries the activation in an over-sized "frame": true signal plus a halo
    # of pad*(layers remaining) zero rows per side, so every conv is a plain valid
    # convolution over static slices; inter-layer zero padding is re-created by
    # masking the halo rows (pure VPU) instead of jnp.pad.
    act = x_ref[...]                               # (B, L + 2*num_conv*pad, 1)
    q_full = None
    if num_conv > 1:                               # hoisted once for all halo masks
        q_full = jax.lax.broadcasted_iota(jnp.int32, (1, act.shape[1], 1), 1)

    for i in range(num_conv):
        m_in = act.shape[1]
        m_out = m_in - ksize + 1
        c_in = act.shape[-1]
        bias = pack_ref[bias_row + i, 0:CHANNELS]                  # (64,)

        if c_in == 1:
            # First layer (C_in == 1): VPU outer product.  Broadcast once, slice taps
            # from the broadcast value (no per-tap lane broadcast).
            actb = jnp.broadcast_to(act, (bsz, m_in, CHANNELS))
            out = actb[:, 0:m_out, :] * pack_ref[w0_row, 0:CHANNELS]
            for k in range(1, ksize):
                out = out + actb[:, k:k + m_out, :] * pack_ref[w0_row + k, 0:CHANNELS]
        else:
            # K accumulating MXU matmuls against pre-split (Cin, Cout) weight slabs
            # (no im2col staging buffer, no lane-misaligned stores).
            w_ref = conv_w_refs[i - 1]                             # (K, Cin, Cout)
            out = jax.lax.dot_general(
                act[:, 0:m_out, :], w_ref[0],
                dimension_numbers=(((2,), (0,)), ((), ())),
                preferred_element_type=jnp.float32)
            for k in range(1, ksize):
                out = out + jax.lax.dot_general(
                    act[:, k:k + m_out, :], w_ref[k],
                    dimension_numbers=(((2,), (0,)), ((), ())),
                    preferred_element_type=jnp.float32)

        margin = pad * (num_conv - 1 - i)          # halo rows to re-zero (static)
        if margin > 0:
            q = q_full[:, :m_out, :]
            keep = (q >= margin) & (q < m_out - margin)
            out = jnp.where(keep, jnp.maximum(out + bias, 0.0), 0.0)
        else:
            out = jnp.maximum(out + bias, 0.0)
        act = out                                  # stays in vregs / VMEM

    # ---- maxpool + flatten ---------------------------------------------------
    # One vectorized sliding-window max over the whole activation, then pooled rows
    # are stored two at a time as lane-dense 128-wide slabs (feature = l*C + c order;
    # fc1_w rows were permuted to this order at init time, so no transpose/reshape).
    l_final, c_out = act.shape[1], act.shape[2]
    n_pool_out = l_final // pool_window
    l_used = n_pool_out * pool_window
    win = l_used - pool_window + 1
    wmax = act[:, 0:win, :]
    for r in range(1, pool_window):
        wmax = jnp.maximum(wmax, act[:, r:r + win, :])             # vectorized max
    # pooled row l == wmax[:, l*pool_window, :]
    for j in range(n_pool_out // 2):
        p0 = (2 * j) * pool_window
        p1 = (2 * j + 1) * pool_window
        slab = jnp.concatenate([wmax[:, p0:p0 + 1, :], wmax[:, p1:p1 + 1, :]], axis=2)
        flat_ref[:, :, (2 * j) * c_out:(2 * j + 2) * c_out] = slab  # 128-lane aligned
    if n_pool_out % 2:                                              # odd trailing row
        j = n_pool_out - 1
        flat_ref[:, :, j * c_out:(j + 1) * c_out] = \
            wmax[:, j * pool_window:j * pool_window + 1, :]

    # ---- MLP head --------------------------------------------------------------
    flat = flat_ref[...]                                            # (B, 1, C*L_pool)
    h = jax.lax.dot_general(flat, fc1_w_ref[...],
                            dimension_numbers=(((2,), (0,)), ((), ())),
                            preferred_element_type=jnp.float32)
    h = jnp.maximum(h + pack_ref[fc1b_row, 0:hidden], 0.0)          # (B, 1, HIDDEN)
    # TODO(synk): nn.Dropout is identity at inference time; training-mode dropout
    #             (pltpu.prng_random_bits masking) is not implemented here.
    w2 = pack_ref[fc2w_row, 0:hidden]                               # (HIDDEN,)
    y = jnp.sum(h * w2, axis=-1, keepdims=True) + pack_ref[fc2b_row, 0:1]
    o_ref[...] = y.astype(o_ref.dtype)                              # (B, 1, 1)


# ---------------------------------------------------------------------------
# Wrapper: one pallas_call, batch grid with weight residency
# ---------------------------------------------------------------------------
def cnn_forward(x_ncl, params, *, kernel_size, pool_size, num_pool_layers,
                batch_block=None):
    assert kernel_size % 2 == 1, "halo scheme assumes odd ('same') kernel sizes"
    conv_stacks = list(params["conv_w_stacks"])        # layers 1..n-1, (K, 64, 64)
    num_conv = len(conv_stacks) + 1                    # layer 0 has C_in == 1
    fc1_w = params["fc1_w"]
    pack = params["pack"]

    B, c_in, L = x_ncl.shape
    assert c_in == 1, "model spec: the first conv has a single input channel"
    pad = kernel_size // 2
    total_pad = num_conv * pad
    frame_len = L + 2 * total_pad

    # NCL -> NLC is a free reshape (C_in == 1); a single tiny pad supplies the zero
    # halo for ALL conv layers at once (inter-layer padding is re-created in-kernel).
    x = jnp.pad(jnp.reshape(x_ncl, (B, L, 1)),
                ((0, 0), (total_pad, total_pad), (0, 0)))

    l_final = L                                        # odd kernel => "same" length
    c_out = CHANNELS
    pool_window = pool_size ** num_pool_layers
    n_pool_out = l_final // pool_window
    flat_features = n_pool_out * c_out
    assert fc1_w.shape[0] == flat_features
    hidden = fc1_w.shape[1]

    # static row indices inside the small-parameter pack
    bias_row = 0
    w0_row = num_conv
    fc1b_row = w0_row + kernel_size
    fc2w_row = fc1b_row + 1
    fc2b_row = fc2w_row + 1

    # batch grid: weights DMA'd once (constant index maps), x/out blocked & pipelined.
    bb = B if batch_block is None else min(batch_block, B)
    assert B % bb == 0, "batch must be a multiple of batch_block"
    grid = (B // bb,)

    kernel = functools.partial(_fused_cnn_kernel, num_conv, kernel_size, pad,
                               pool_window, hidden,
                               bias_row, w0_row, fc1b_row, fc2w_row, fc2b_row)

    in_specs = (
        [pl.BlockSpec((bb, frame_len, 1), lambda b: (b, 0, 0))]            # x
        + [pl.BlockSpec(w.shape, lambda b: (0, 0, 0)) for w in conv_stacks]  # weights
        + [pl.BlockSpec(fc1_w.shape, lambda b: (0, 0)),                    # fc1_w
           pl.BlockSpec(pack.shape, lambda b: (0, 0))]                     # param pack
    )

    out = pl.pallas_call(
        kernel,
        grid=grid,
        out_shape=jax.ShapeDtypeStruct((B, 1, 1), jnp.float32),
        in_specs=in_specs,
        out_specs=pl.BlockSpec((bb, 1, 1), lambda b: (b, 0, 0)),
        scratch_shapes=[
            pltpu.VMEM((bb, 1, flat_features), jnp.float32),   # pooled/flat fc1 input
        ],
        compiler_params=pltpu.CompilerParams(
            dimension_semantics=("parallel",)),                # v7x: 2 TCs split grid
    )(x, *conv_stacks, fc1_w, pack)
    return jnp.reshape(out, (B, 1))


# ---------------------------------------------------------------------------
# Parameters: PyTorch-layout init + one-time layout preparation for the kernel
# ---------------------------------------------------------------------------
def init_params_torch_layout(key, num_conv_layers, kernel_size, num_pool_layers,
                             pool_size, time_steps=TIME_STEPS):
    """Parameters with exactly the nn.Module shapes and default uniform init."""
    keys = jax.random.split(key, 2 * num_conv_layers + 4)
    conv_w, conv_b = [], []
    c_in = 1
    for i in range(num_conv_layers):
        bound = 1.0 / (c_in * kernel_size) ** 0.5
        conv_w.append(jax.random.uniform(keys[2 * i], (CHANNELS, c_in, kernel_size),
                                         jnp.float32, -bound, bound))
        conv_b.append(jax.random.uniform(keys[2 * i + 1], (CHANNELS,),
                                         jnp.float32, -bound, bound))
        c_in = CHANNELS
    f_in = CHANNELS * (time_steps // pool_size ** num_pool_layers)
    b1 = 1.0 / f_in ** 0.5
    b2 = 1.0 / HIDDEN ** 0.5
    return {
        "conv_w": conv_w, "conv_b": conv_b,
        "fc1_w": jax.random.uniform(keys[-4], (HIDDEN, f_in), jnp.float32, -b1, b1),
        "fc1_b": jax.random.uniform(keys[-3], (HIDDEN,), jnp.float32, -b1, b1),
        "fc2_w": jax.random.uniform(keys[-2], (1, HIDDEN), jnp.float32, -b2, b2),
        "fc2_b": jax.random.uniform(keys[-1], (1,), jnp.float32, -b2, b2),
    }


def prepare_params(tp):
    """One-time layout preparation so the kernel never transposes or re-stages.

    * C_in==64 conv weights -> per-tap (Cin, Cout) slabs stacked as (K, Cin, Cout).
    * fc1 weight rows permuted from PyTorch's channel-major flatten (feature = c*L+l)
      to the kernel's NLC flatten order (feature = l*C + c).
    * all tiny params packed into one (rows, 128) f32 array:
        rows [0, num_conv)              conv biases            (lanes 0:64)
        rows [num_conv, num_conv+K)     first conv weight taps (lanes 0:64)
        row  num_conv+K                 fc1_b                  (lanes 0:HIDDEN)
        row  num_conv+K+1               fc2_w (as a vector)    (lanes 0:HIDDEN)
        row  num_conv+K+2               fc2_b                  (lane 0)
    """
    conv_ws, conv_bs = tp["conv_w"], tp["conv_b"]
    num_conv = len(conv_ws)
    ksize = conv_ws[0].shape[2]
    assert conv_ws[0].shape[1] == 1, "first conv must have C_in == 1"

    # (Cout, Cin, K) -> (K, Cin, Cout) slab stacks for the accumulate-K MXU path.
    conv_w_stacks = [jnp.transpose(w, (2, 1, 0)) for w in conv_ws[1:]]

    hidden, f_in = tp["fc1_w"].shape
    c = conv_ws[-1].shape[0]
    l_pool = f_in // c
    fc1_w = (tp["fc1_w"].reshape(hidden, c, l_pool)
             .transpose(2, 1, 0).reshape(l_pool * c, hidden))

    rows = num_conv + ksize + 3
    pack = jnp.zeros((rows, 128), jnp.float32)
    for i, b in enumerate(conv_bs):
        pack = pack.at[i, :b.shape[0]].set(b)
    w0 = conv_ws[0][:, 0, :]                                   # (Cout, K)
    for k in range(ksize):
        pack = pack.at[num_conv + k, :w0.shape[0]].set(w0[:, k])
    pack = pack.at[num_conv + ksize, :hidden].set(tp["fc1_b"])
    pack = pack.at[num_conv + ksize + 1, :hidden].set(tp["fc2_w"][0])
    pack = pack.at[num_conv + ksize + 2, 0].set(tp["fc2_b"][0])

    return {"conv_w_stacks": conv_w_stacks, "fc1_w": fc1_w, "pack": pack}


# ---------------------------------------------------------------------------
# Pure-JAX reference of the PyTorch module (eval mode), for a correctness check
# ---------------------------------------------------------------------------
def reference_forward(x_ncl, tp, *, kernel_size, pool_size, num_pool_layers):
    pad = kernel_size // 2
    x = x_ncl
    for w, b in zip(tp["conv_w"], tp["conv_b"]):
        x = jax.lax.conv_general_dilated(
            x, w, window_strides=(1,), padding=[(pad, pad)],
            dimension_numbers=("NCH", "OIH", "NCH"))
        x = jnp.maximum(x + b[None, :, None], 0.0)
    for _ in range(num_pool_layers):
        B, C, L = x.shape
        lp = L // pool_size
        x = jnp.max(x[:, :, :lp * pool_size].reshape(B, C, lp, pool_size), axis=3)
    flat = x.reshape(x.shape[0], -1)               # channel-major, matches x.view(B,-1)
    h = jnp.maximum(flat @ tp["fc1_w"].T + tp["fc1_b"], 0.0)
    return h @ tp["fc2_w"].T + tp["fc2_b"]


if __name__ == "__main__":
    num_conv_layers = 2
    kernel_size = 3
    num_pool_layers = 1
    pool_size = 2
    batch = 2

    key = jax.random.PRNGKey(0)
    k_param, k_x = jax.random.split(key)
    torch_params = init_params_torch_layout(k_param, num_conv_layers, kernel_size,
                                            num_pool_layers, pool_size)
    params = prepare_params(torch_params)

    # PyTorch-style input: (batch, channels=1, time_steps)
    x = jax.random.normal(k_x, (batch, 1, TIME_STEPS), dtype=jnp.float32)

    fwd = jax.jit(functools.partial(cnn_forward,
                                    kernel_size=kernel_size,
                                    pool_size=pool_size,
                                    num_pool_layers=num_pool_layers))
    out = jax.block_until_ready(fwd(x, params))

    assert out.shape == (batch, 1), out.shape
    assert bool(jnp.all(jnp.isfinite(out)))

    ref = reference_forward(x, torch_params, kernel_size=kernel_size,
                            pool_size=pool_size, num_pool_layers=num_pool_layers)
    assert bool(jnp.allclose(out, ref, atol=1e-3, rtol=1e-3)), (out, ref)

    print("KERNEL_OK")
</pallas_src>

<mosaic_0001>
module attributes {stable_mosaic.version = 11 : i64} {
  func.func @_fused_cnn_kernel(%arg0: i32, %arg1: memref<2x56x1xf32, #tpu.memory_space<vmem>>, %arg2: memref<3x64x64xf32, #tpu.memory_space<vmem>>, %arg3: memref<1664x50xf32, #tpu.memory_space<vmem>>, %arg4: memref<8x128xf32, #tpu.memory_space<vmem>>, %arg5: memref<2x1x1xf32, #tpu.memory_space<vmem>>, %arg6: memref<2x1x1664xf32, #tpu.memory_space<vmem>>) attributes {dimension_semantics = [#tpu.dimension_semantics<parallel>], iteration_bounds = array<i64: 1>, scalar_prefetch = 0 : i64, scratch_operands = 1 : i64, tpu.core_type = #tpu.core_type<tc>, window_params = [{transform_indices = @transform_0, window_bounds = array<i64: 2, 56, 1>}, {pipeline_mode = #tpu.pipeline_mode<synchronous>, transform_indices = @transform_1, window_bounds = array<i64: 3, 64, 64>}, {pipeline_mode = #tpu.pipeline_mode<synchronous>, transform_indices = @transform_2, window_bounds = array<i64: 1664, 50>}, {pipeline_mode = #tpu.pipeline_mode<synchronous>, transform_indices = @transform_3, window_bounds = array<i64: 8, 128>}, {transform_indices = @transform_4, window_bounds = array<i64: 2, 1, 1>}]} {
    %c0 = arith.constant 0 : index
    %c0_0 = arith.constant 0 : index
    %c0_1 = arith.constant 0 : index
    %0 = vector.load %arg1[%c0, %c0_0, %c0_1] : memref<2x56x1xf32, #tpu.memory_space<vmem>>, vector<2x56x1xf32>
    %1 = tpu.iota {dimensions = array<i32: 1>} : vector<1x56x1xi32>
    %c0_2 = arith.constant 0 : index
    %c0_3 = arith.constant 0 : index
    %2 = vector.load %arg4[%c0_2, %c0_3] : memref<8x128xf32, #tpu.memory_space<vmem>>, vector<1x64xf32>
    %3 = vector.shape_cast %2 : vector<1x64xf32> to vector<64xf32>
    %4 = vector.shape_cast %0 : vector<2x56x1xf32> to vector<2x56x1xf32>
    %5 = vector.broadcast %4 : vector<2x56x1xf32> to vector<2x56x64xf32>
    %6 = vector.extract_strided_slice %5 {offsets = [0, 0, 0], sizes = [2, 54, 64], strides = [1, 1, 1]} : vector<2x56x64xf32> to vector<2x54x64xf32>
    %c2 = arith.constant 2 : index
    %c0_4 = arith.constant 0 : index
    %7 = vector.load %arg4[%c2, %c0_4] : memref<8x128xf32, #tpu.memory_space<vmem>>, vector<1x64xf32>
    %8 = vector.shape_cast %7 : vector<1x64xf32> to vector<64xf32>
    %9 = vector.shape_cast %8 : vector<64xf32> to vector<1x1x64xf32>
    %10 = vector.broadcast %9 : vector<1x1x64xf32> to vector<2x54x64xf32>
    %11 = arith.mulf %6, %10 : vector<2x54x64xf32>
    %12 = vector.extract_strided_slice %5 {offsets = [0, 1, 0], sizes = [2, 54, 64], strides = [1, 1, 1]} : vector<2x56x64xf32> to vector<2x54x64xf32>
    %c3 = arith.constant 3 : index
    %c0_5 = arith.constant 0 : index
    %13 = vector.load %arg4[%c3, %c0_5] : memref<8x128xf32, #tpu.memory_space<vmem>>, vector<1x64xf32>
    %14 = vector.shape_cast %13 : vector<1x64xf32> to vector<64xf32>
    %15 = vector.shape_cast %14 : vector<64xf32> to vector<1x1x64xf32>
    %16 = vector.broadcast %15 : vector<1x1x64xf32> to vector<2x54x64xf32>
    %17 = arith.mulf %12, %16 : vector<2x54x64xf32>
    %18 = arith.addf %11, %17 : vector<2x54x64xf32>
    %19 = vector.extract_strided_slice %5 {offsets = [0, 2, 0], sizes = [2, 54, 64], strides = [1, 1, 1]} : vector<2x56x64xf32> to vector<2x54x64xf32>
    %c4 = arith.constant 4 : index
    %c0_6 = arith.constant 0 : index
    %20 = vector.load %arg4[%c4, %c0_6] : memref<8x128xf32, #tpu.memory_space<vmem>>, vector<1x64xf32>
    %21 = vector.shape_cast %20 : vector<1x64xf32> to vector<64xf32>
    %22 = vector.shape_cast %21 : vector<64xf32> to vector<1x1x64xf32>
    %23 = vector.broadcast %22 : vector<1x1x64xf32> to vector<2x54x64xf32>
    %24 = arith.mulf %19, %23 : vector<2x54x64xf32>
    %25 = arith.addf %18, %24 : vector<2x54x64xf32>
    %26 = vector.extract_strided_slice %1 {offsets = [0, 0, 0], sizes = [1, 54, 1], strides = [1, 1, 1]} : vector<1x56x1xi32> to vector<1x54x1xi32>
    %c1_i32 = arith.constant 1 : i32
    %27 = vector.broadcast %c1_i32 : i32 to vector<1x54x1xi32>
    %28 = arith.cmpi sge, %26, %27 : vector<1x54x1xi32>
    %c53_i32 = arith.constant 53 : i32
    %29 = vector.broadcast %c53_i32 : i32 to vector<1x54x1xi32>
    %30 = arith.cmpi slt, %26, %29 : vector<1x54x1xi32>
    %31 = arith.andi %28, %30 : vector<1x54x1xi1>
    %32 = vector.shape_cast %3 : vector<64xf32> to vector<1x1x64xf32>
    %33 = vector.broadcast %32 : vector<1x1x64xf32> to vector<2x54x64xf32>
    %34 = arith.addf %25, %33 : vector<2x54x64xf32>
    %cst = arith.constant 0.000000e+00 : f32
    %35 = vector.broadcast %cst : f32 to vector<2x54x64xf32>
    %36 = arith.maximumf %34, %35 : vector<2x54x64xf32>
    %cst_7 = arith.constant 0.000000e+00 : f32
    %37 = vector.shape_cast %31 : vector<1x54x1xi1> to vector<1x54x1xi1>
    %38 = vector.broadcast %37 : vector<1x54x1xi1> to vector<2x54x64xi1>
    %39 = vector.broadcast %cst_7 : f32 to vector<2x54x64xf32>
    %40 = arith.select %38, %36, %39 : vector<2x54x64xi1>, vector<2x54x64xf32>
    %c1 = arith.constant 1 : index
    %c0_8 = arith.constant 0 : index
    %41 = vector.load %arg4[%c1, %c0_8] : memref<8x128xf32, #tpu.memory_space<vmem>>, vector<1x64xf32>
    %42 = vector.shape_cast %41 : vector<1x64xf32> to vector<64xf32>
    %43 = vector.extract_strided_slice %40 {offsets = [0, 0, 0], sizes = [2, 52, 64], strides = [1, 1, 1]} : vector<2x54x64xf32> to vector<2x52x64xf32>
    %c0_9 = arith.constant 0 : index
    %c0_10 = arith.constant 0 : index
    %c0_11 = arith.constant 0 : index
    %44 = vector.load %arg2[%c0_9, %c0_10, %c0_11] : memref<3x64x64xf32, #tpu.memory_space<vmem>>, vector<1x64x64xf32>
    %45 = vector.shape_cast %44 : vector<1x64x64xf32> to vector<64x64xf32>
    %cst_12 = arith.constant dense<0.000000e+00> : vector<2x52x64xf32>
    %46 = tpu.matmul %43, %45, %cst_12 {dimension_numbers = #tpu.dot_dimension_numbers<[2], [0], [0, 1], [1], [0, 0, 0, 1, 1, 1], [], []>} : vector<2x52x64xf32>, vector<64x64xf32>, vector<2x52x64xf32> -> vector<2x52x64xf32>
    %47 = vector.extract_strided_slice %40 {offsets = [0, 1, 0], sizes = [2, 52, 64], strides = [1, 1, 1]} : vector<2x54x64xf32> to vector<2x52x64xf32>
    %c1_13 = arith.constant 1 : index
    %c0_14 = arith.constant 0 : index
    %c0_15 = arith.constant 0 : index
    %48 = vector.load %arg2[%c1_13, %c0_14, %c0_15] : memref<3x64x64xf32, #tpu.memory_space<vmem>>, vector<1x64x64xf32>
    %49 = vector.shape_cast %48 : vector<1x64x64xf32> to vector<64x64xf32>
    %cst_16 = arith.constant dense<0.000000e+00> : vector<2x52x64xf32>
    %50 = tpu.matmul %47, %49, %cst_16 {dimension_numbers = #tpu.dot_dimension_numbers<[2], [0], [0, 1], [1], [0, 0, 0, 1, 1, 1], [], []>} : vector<2x52x64xf32>, vector<64x64xf32>, vector<2x52x64xf32> -> vector<2x52x64xf32>
    %51 = arith.addf %46, %50 : vector<2x52x64xf32>
    %52 = vector.extract_strided_slice %40 {offsets = [0, 2, 0], sizes = [2, 52, 64], strides = [1, 1, 1]} : vector<2x54x64xf32> to vector<2x52x64xf32>
    %c2_17 = arith.constant 2 : index
    %c0_18 = arith.constant 0 : index
    %c0_19 = arith.constant 0 : index
    %53 = vector.load %arg2[%c2_17, %c0_18, %c0_19] : memref<3x64x64xf32, #tpu.memory_space<vmem>>, vector<1x64x64xf32>
    %54 = vector.shape_cast %53 : vector<1x64x64xf32> to vector<64x64xf32>
    %cst_20 = arith.constant dense<0.000000e+00> : vector<2x52x64xf32>
    %55 = tpu.matmul %52, %54, %cst_20 {dimension_numbers = #tpu.dot_dimension_numbers<[2], [0], [0, 1], [1], [0, 0, 0, 1, 1, 1], [], []>} : vector<2x52x64xf32>, vector<64x64xf32>, vector<2x52x64xf32> -> vector<2x52x64xf32>
    %56 = arith.addf %51, %55 : vector<2x52x64xf32>
    %57 = vector.shape_cast %42 : vector<64xf32> to vector<1x1x64xf32>
    %58 = vector.broadcast %57 : vector<1x1x64xf32> to vector<2x52x64xf32>
    %59 = arith.addf %56, %58 : vector<2x52x64xf32>
    %cst_21 = arith.constant 0.000000e+00 : f32
    %60 = vector.broadcast %cst_21 : f32 to vector<2x52x64xf32>
    %61 = arith.maximumf %59, %60 : vector<2x52x64xf32>
    %62 = vector.extract_strided_slice %61 {offsets = [0, 0, 0], sizes = [2, 51, 64], strides = [1, 1, 1]} : vector<2x52x64xf32> to vector<2x51x64xf32>
    %63 = vector.extract_strided_slice %61 {offsets = [0, 1, 0], sizes = [2, 51, 64], strides = [1, 1, 1]} : vector<2x52x64xf32> to vector<2x51x64xf32>
    %64 = arith.maximumf %62, %63 : vector<2x51x64xf32>
    %65 = vector.extract_strided_slice %64 {offsets = [0, 0, 0], sizes = [2, 1, 64], strides = [1, 1, 1]} : vector<2x51x64xf32> to vector<2x1x64xf32>
    %66 = vector.extract_strided_slice %64 {offsets = [0, 2, 0], sizes = [2, 1, 64], strides = [1, 1, 1]} : vector<2x51x64xf32> to vector<2x1x64xf32>
    %67 = tpu.concatenate %65, %66 in 2 : vector<2x1x64xf32>, vector<2x1x64xf32> -> vector<2x1x128xf32>
    %c0_22 = arith.constant 0 : index
    %c0_23 = arith.constant 0 : index
    %c0_24 = arith.constant 0 : index
    %68 = vector.load %arg6[%c0_22, %c0_23, %c0_24] : memref<2x1x1664xf32, #tpu.memory_space<vmem>>, vector<2x1x128xf32>
    tpu.vector_store %arg6[%c0_22, %c0_23, %c0_24], %67 {strides = array<i32>} : memref<2x1x1664xf32, #tpu.memory_space<vmem>>, vector<2x1x128xf32>,
    %69 = vector.extract_strided_slice %64 {offsets = [0, 4, 0], sizes = [2, 1, 64], strides = [1, 1, 1]} : vector<2x51x64xf32> to vector<2x1x64xf32>
    %70 = vector.extract_strided_slice %64 {offsets = [0, 6, 0], sizes = [2, 1, 64], strides = [1, 1, 1]} : vector<2x51x64xf32> to vector<2x1x64xf32>
    %71 = tpu.concatenate %69, %70 in 2 : vector<2x1x64xf32>, vector<2x1x64xf32> -> vector<2x1x128xf32>
    %c0_25 = arith.constant 0 : index
    %c0_26 = arith.constant 0 : index
    %c128 = arith.constant 128 : index
    %72 = vector.load %arg6[%c0_25, %c0_26, %c128] : memref<2x1x1664xf32, #tpu.memory_space<vmem>>, vector<2x1x128xf32>
    tpu.vector_store %arg6[%c0_25, %c0_26, %c128], %71 {strides = array<i32>} : memref<2x1x1664xf32, #tpu.memory_space<vmem>>, vector<2x1x128xf32>,
    %73 = vector.extract_strided_slice %64 {offsets = [0, 8, 0], sizes = [2, 1, 64], strides = [1, 1, 1]} : vector<2x51x64xf32> to vector<2x1x64xf32>
    %74 = vector.extract_strided_slice %64 {offsets = [0, 10, 0], sizes = [2, 1, 64], strides = [1, 1, 1]} : vector<2x51x64xf32> to vector<2x1x64xf32>
    %75 = tpu.concatenate %73, %74 in 2 : vector<2x1x64xf32>, vector<2x1x64xf32> -> vector<2x1x128xf32>
    %c0_27 = arith.constant 0 : index
    %c0_28 = arith.constant 0 : index
    %c256 = arith.constant 256 : index
    %76 = vector.load %arg6[%c0_27, %c0_28, %c256] : memref<2x1x1664xf32, #tpu.memory_space<vmem>>, vector<2x1x128xf32>
    tpu.vector_store %arg6[%c0_27, %c0_28, %c256], %75 {strides = array<i32>} : memref<2x1x1664xf32, #tpu.memory_space<vmem>>, vector<2x1x128xf32>,
    %77 = vector.extract_strided_slice %64 {offsets = [0, 12, 0], sizes = [2, 1, 64], strides = [1, 1, 1]} : vector<2x51x64xf32> to vector<2x1x64xf32>
    %78 = vector.extract_strided_slice %64 {offsets = [0, 14, 0], sizes = [2, 1, 64], strides = [1, 1, 1]} : vector<2x51x64xf32> to vector<2x1x64xf32>
    %79 = tpu.concatenate %77, %78 in 2 : vector<2x1x64xf32>, vector<2x1x64xf32> -> vector<2x1x128xf32>
    %c0_29 = arith.constant 0 : index
    %c0_30 = arith.constant 0 : index
    %c384 = arith.constant 384 : index
    %80 = vector.load %arg6[%c0_29, %c0_30, %c384] : memref<2x1x1664xf32, #tpu.memory_space<vmem>>, vector<2x1x128xf32>
    tpu.vector_store %arg6[%c0_29, %c0_30, %c384], %79 {strides = array<i32>} : memref<2x1x1664xf32, #tpu.memory_space<vmem>>, vector<2x1x128xf32>,
    %81 = vector.extract_strided_slice %64 {offsets = [0, 16, 0], sizes = [2, 1, 64], strides = [1, 1, 1]} : vector<2x51x64xf32> to vector<2x1x64xf32>
    %82 = vector.extract_strided_slice %64 {offsets = [0, 18, 0], sizes = [2, 1, 64], strides = [1, 1, 1]} : vector<2x51x64xf32> to vector<2x1x64xf32>
    %83 = tpu.concatenate %81, %82 in 2 : vector<2x1x64xf32>, vector<2x1x64xf32> -> vector<2x1x128xf32>
    %c0_31 = arith.constant 0 : index
    %c0_32 = arith.constant 0 : index
    %c512 = arith.constant 512 : index
    %84 = vector.load %arg6[%c0_31, %c0_32, %c512] : memref<2x1x1664xf32, #tpu.memory_space<vmem>>, vector<2x1x128xf32>
    tpu.vector_store %arg6[%c0_31, %c0_32, %c512], %83 {strides = array<i32>} : memref<2x1x1664xf32, #tpu.memory_space<vmem>>, vector<2x1x128xf32>,
    %85 = vector.extract_strided_slice %64 {offsets = [0, 20, 0], sizes = [2, 1, 64], strides = [1, 1, 1]} : vector<2x51x64xf32> to vector<2x1x64xf32>
    %86 = vector.extract_strided_slice %64 {offsets = [0, 22, 0], sizes = [2, 1, 64], strides = [1, 1, 1]} : vector<2x51x64xf32> to vector<2x1x64xf32>
    %87 = tpu.concatenate %85, %86 in 2 : vector<2x1x64xf32>, vector<2x1x64xf32> -> vector<2x1x128xf32>
    %c0_33 = arith.constant 0 : index
    %c0_34 = arith.constant 0 : index
    %c640 = arith.constant 640 : index
    %88 = vector.load %arg6[%c0_33, %c0_34, %c640] : memref<2x1x1664xf32, #tpu.memory_space<vmem>>, vector<2x1x128xf32>
    tpu.vector_store %arg6[%c0_33, %c0_34, %c640], %87 {strides = array<i32>} : memref<2x1x1664xf32, #tpu.memory_space<vmem>>, vector<2x1x128xf32>,
    %89 = vector.extract_strided_slice %64 {offsets = [0, 24, 0], sizes = [2, 1, 64], strides = [1, 1, 1]} : vector<2x51x64xf32> to vector<2x1x64xf32>
    %90 = vector.extract_strided_slice %64 {offsets = [0, 26, 0], sizes = [2, 1, 64], strides = [1, 1, 1]} : vector<2x51x64xf32> to vector<2x1x64xf32>
    %91 = tpu.concatenate %89, %90 in 2 : vector<2x1x64xf32>, vector<2x1x64xf32> -> vector<2x1x128xf32>
    %c0_35 = arith.constant 0 : index
    %c0_36 = arith.constant 0 : index
    %c768 = arith.constant 768 : index
    %92 = vector.load %arg6[%c0_35, %c0_36, %c768] : memref<2x1x1664xf32, #tpu.memory_space<vmem>>, vector<2x1x128xf32>
    tpu.vector_store %arg6[%c0_35, %c0_36, %c768], %91 {strides = array<i32>} : memref<2x1x1664xf32, #tpu.memory_space<vmem>>, vector<2x1x128xf32>,
    %93 = vector.extract_strided_slice %64 {offsets = [0, 28, 0], sizes = [2, 1, 64], strides = [1, 1, 1]} : vector<2x51x64xf32> to vector<2x1x64xf32>
    %94 = vector.extract_strided_slice %64 {offsets = [0, 30, 0], sizes = [2, 1, 64], strides = [1, 1, 1]} : vector<2x51x64xf32> to vector<2x1x64xf32>
    %95 = tpu.concatenate %93, %94 in 2 : vector<2x1x64xf32>, vector<2x1x64xf32> -> vector<2x1x128xf32>
    %c0_37 = arith.constant 0 : index
    %c0_38 = arith.constant 0 : index
    %c896 = arith.constant 896 : index
    %96 = vector.load %arg6[%c0_37, %c0_38, %c896] : memref<2x1x1664xf32, #tpu.memory_space<vmem>>, vector<2x1x128xf32>
    tpu.vector_store %arg6[%c0_37, %c0_38, %c896], %95 {strides = array<i32>} : memref<2x1x1664xf32, #tpu.memory_space<vmem>>, vector<2x1x128xf32>,
    %97 = vector.extract_strided_slice %64 {offsets = [0, 32, 0], sizes = [2, 1, 64], strides = [1, 1, 1]} : vector<2x51x64xf32> to vector<2x1x64xf32>
    %98 = vector.extract_strided_slice %64 {offsets = [0, 34, 0], sizes = [2, 1, 64], strides = [1, 1, 1]} : vector<2x51x64xf32> to vector<2x1x64xf32>
    %99 = tpu.concatenate %97, %98 in 2 : vector<2x1x64xf32>, vector<2x1x64xf32> -> vector<2x1x128xf32>
    %c0_39 = arith.constant 0 : index
    %c0_40 = arith.constant 0 : index
    %c1024 = arith.constant 1024 : index
    %100 = vector.load %arg6[%c0_39, %c0_40, %c1024] : memref<2x1x1664xf32, #tpu.memory_space<vmem>>, vector<2x1x128xf32>
    tpu.vector_store %arg6[%c0_39, %c0_40, %c1024], %99 {strides = array<i32>} : memref<2x1x1664xf32, #tpu.memory_space<vmem>>, vector<2x1x128xf32>,
    %101 = vector.extract_strided_slice %64 {offsets = [0, 36, 0], sizes = [2, 1, 64], strides = [1, 1, 1]} : vector<2x51x64xf32> to vector<2x1x64xf32>
    %102 = vector.extract_strided_slice %64 {offsets = [0, 38, 0], sizes = [2, 1, 64], strides = [1, 1, 1]} : vector<2x51x64xf32> to vector<2x1x64xf32>
    %103 = tpu.concatenate %101, %102 in 2 : vector<2x1x64xf32>, vector<2x1x64xf32> -> vector<2x1x128xf32>
    %c0_41 = arith.constant 0 : index
    %c0_42 = arith.constant 0 : index
    %c1152 = arith.constant 1152 : index
    %104 = vector.load %arg6[%c0_41, %c0_42, %c1152] : memref<2x1x1664xf32, #tpu.memory_space<vmem>>, vector<2x1x128xf32>
    tpu.vector_store %arg6[%c0_41, %c0_42, %c1152], %103 {strides = array<i32>} : memref<2x1x1664xf32, #tpu.memory_space<vmem>>, vector<2x1x128xf32>,
    %105 = vector.extract_strided_slice %64 {offsets = [0, 40, 0], sizes = [2, 1, 64], strides = [1, 1, 1]} : vector<2x51x64xf32> to vector<2x1x64xf32>
    %106 = vector.extract_strided_slice %64 {offsets = [0, 42, 0], sizes = [2, 1, 64], strides = [1, 1, 1]} : vector<2x51x64xf32> to vector<2x1x64xf32>
    %107 = tpu.concatenate %105, %106 in 2 : vector<2x1x64xf32>, vector<2x1x64xf32> -> vector<2x1x128xf32>
    %c0_43 = arith.constant 0 : index
    %c0_44 = arith.constant 0 : index
    %c1280 = arith.constant 1280 : index
    %108 = vector.load %arg6[%c0_43, %c0_44, %c1280] : memref<2x1x1664xf32, #tpu.memory_space<vmem>>, vector<2x1x128xf32>
    tpu.vector_store %arg6[%c0_43, %c0_44, %c1280], %107 {strides = array<i32>} : memref<2x1x1664xf32, #tpu.memory_space<vmem>>, vector<2x1x128xf32>,
    %109 = vector.extract_strided_slice %64 {offsets = [0, 44, 0], sizes = [2, 1, 64], strides = [1, 1, 1]} : vector<2x51x64xf32> to vector<2x1x64xf32>
    %110 = vector.extract_strided_slice %64 {offsets = [0, 46, 0], sizes = [2, 1, 64], strides = [1, 1, 1]} : vector<2x51x64xf32> to vector<2x1x64xf32>
    %111 = tpu.concatenate %109, %110 in 2 : vector<2x1x64xf32>, vector<2x1x64xf32> -> vector<2x1x128xf32>
    %c0_45 = arith.constant 0 : index
    %c0_46 = arith.constant 0 : index
    %c1408 = arith.constant 1408 : index
    %112 = vector.load %arg6[%c0_45, %c0_46, %c1408] : memref<2x1x1664xf32, #tpu.memory_space<vmem>>, vector<2x1x128xf32>
    tpu.vector_store %arg6[%c0_45, %c0_46, %c1408], %111 {strides = array<i32>} : memref<2x1x1664xf32, #tpu.memory_space<vmem>>, vector<2x1x128xf32>,
    %113 = vector.extract_strided_slice %64 {offsets = [0, 48, 0], sizes = [2, 1, 64], strides = [1, 1, 1]} : vector<2x51x64xf32> to vector<2x1x64xf32>
    %114 = vector.extract_strided_slice %64 {offsets = [0, 50, 0], sizes = [2, 1, 64], strides = [1, 1, 1]} : vector<2x51x64xf32> to vector<2x1x64xf32>
    %115 = tpu.concatenate %113, %114 in 2 : vector<2x1x64xf32>, vector<2x1x64xf32> -> vector<2x1x128xf32>
    %c0_47 = arith.constant 0 : index
    %c0_48 = arith.constant 0 : index
    %c1536 = arith.constant 1536 : index
    %116 = vector.load %arg6[%c0_47, %c0_48, %c1536] : memref<2x1x1664xf32, #tpu.memory_space<vmem>>, vector<2x1x128xf32>
    tpu.vector_store %arg6[%c0_47, %c0_48, %c1536], %115 {strides = array<i32>} : memref<2x1x1664xf32, #tpu.memory_space<vmem>>, vector<2x1x128xf32>,
    %c0_49 = arith.constant 0 : index
    %c0_50 = arith.constant 0 : index
    %c0_51 = arith.constant 0 : index
    %117 = vector.load %arg6[%c0_49, %c0_50, %c0_51] : memref<2x1x1664xf32, #tpu.memory_space<vmem>>, vector<2x1x1664xf32>
    %c0_52 = arith.constant 0 : index
    %c0_53 = arith.constant 0 : index
    %118 = vector.load %arg3[%c0_52, %c0_53] : memref<1664x50xf32, #tpu.memory_space<vmem>>, vector<1664x50xf32>
    %cst_54 = arith.constant dense<0.000000e+00> : vector<2x1x50xf32>
    %119 = tpu.matmul %117, %118, %cst_54 {dimension_numbers = #tpu.dot_dimension_numbers<[2], [0], [0, 1], [1], [0, 0, 0, 1, 1, 1], [], []>} : vector<2x1x1664xf32>, vector<1664x50xf32>, vector<2x1x50xf32> -> vector<2x1x50xf32>
    %c5 = arith.constant 5 : index
    %c0_55 = arith.constant 0 : index
    %120 = vector.load %arg4[%c5, %c0_55] : memref<8x128xf32, #tpu.memory_space<vmem>>, vector<1x50xf32>
    %121 = vector.shape_cast %120 : vector<1x50xf32> to vector<50xf32>
    %122 = vector.shape_cast %121 : vector<50xf32> to vector<1x1x50xf32>
    %123 = vector.broadcast %122 : vector<1x1x50xf32> to vector<2x1x50xf32>
    %124 = arith.addf %119, %123 : vector<2x1x50xf32>
    %cst_56 = arith.constant 0.000000e+00 : f32
    %125 = vector.broadcast %cst_56 : f32 to vector<2x1x50xf32>
    %126 = arith.maximumf %124, %125 : vector<2x1x50xf32>
    %c6 = arith.constant 6 : index
    %c0_57 = arith.constant 0 : index
    %127 = vector.load %arg4[%c6, %c0_57] : memref<8x128xf32, #tpu.memory_space<vmem>>, vector<1x50xf32>
    %128 = vector.shape_cast %127 : vector<1x50xf32> to vector<50xf32>
    %129 = vector.shape_cast %128 : vector<50xf32> to vector<1x1x50xf32>
    %130 = vector.broadcast %129 : vector<1x1x50xf32> to vector<2x1x50xf32>
    %131 = arith.mulf %126, %130 : vector<2x1x50xf32>
    %cst_58 = arith.constant dense<0.000000e+00> : vector<2x1xf32>
    %132 = vector.multi_reduction <add>, %131, %cst_58 [2] : vector<2x1x50xf32> to vector<2x1xf32>
    %133 = vector.shape_cast %132 : vector<2x1xf32> to vector<2x1x1xf32>
    %c7 = arith.constant 7 : index
    %c0_59 = arith.constant 0 : index
    %134 = vector.load %arg4[%c7, %c0_59] : memref<8x128xf32, #tpu.memory_space<vmem>>, vector<1x1xf32>
    %135 = vector.shape_cast %134 : vector<1x1xf32> to vector<1xf32>
    %136 = vector.shape_cast %135 : vector<1xf32> to vector<1x1x1xf32>
    %137 = vector.broadcast %136 : vector<1x1x1xf32> to vector<2x1x1xf32>
    %138 = arith.addf %133, %137 : vector<2x1x1xf32>
    %c0_60 = arith.constant 0 : index
    %c0_61 = arith.constant 0 : index
    %c0_62 = arith.constant 0 : index
    %139 = vector.load %arg5[%c0_60, %c0_61, %c0_62] : memref<2x1x1xf32, #tpu.memory_space<vmem>>, vector<2x1x1xf32>
    tpu.vector_store %arg5[%c0_60, %c0_61, %c0_62], %138 {strides = array<i32>} : memref<2x1x1xf32, #tpu.memory_space<vmem>>, vector<2x1x1xf32>,
    return
  }
  func.func @transform_0(%arg0: i32) -> (i32, i32, i32) {
    %c0_i32 = arith.constant 0 : i32
    %c0_i32_0 = arith.constant 0 : i32
    %c0_i32_1 = arith.constant 0 : i32
    return %arg0, %c0_i32, %c0_i32_0 : i32, i32, i32
  }
  func.func @transform_1(%arg0: i32) -> (i32, i32, i32) {
    %c0_i32 = arith.constant 0 : i32
    %c0_i32_0 = arith.constant 0 : i32
    %c0_i32_1 = arith.constant 0 : i32
    %c0_i32_2 = arith.constant 0 : i32
    return %c0_i32, %c0_i32_0, %c0_i32_1 : i32, i32, i32
  }
  func.func @transform_2(%arg0: i32) -> (i32, i32) {
    %c0_i32 = arith.constant 0 : i32
    %c0_i32_0 = arith.constant 0 : i32
    %c0_i32_1 = arith.constant 0 : i32
    return %c0_i32, %c0_i32_0 : i32, i32
  }
  func.func @transform_3(%arg0: i32) -> (i32, i32) {
    %c0_i32 = arith.constant 0 : i32
    %c0_i32_0 = arith.constant 0 : i32
    %c0_i32_1 = arith.constant 0 : i32
    return %c0_i32, %c0_i32_0 : i32, i32
  }
  func.func @transform_4(%arg0: i32) -> (i32, i32, i32) {
    %c0_i32 = arith.constant 0 : i32
    %c0_i32_0 = arith.constant 0 : i32
    %c0_i32_1 = arith.constant 0 : i32
    return %arg0, %c0_i32, %c0_i32_0 : i32, i32, i32
  }
}

</mosaic_0001>

<bundles_post_ra>
// kernel: cnn_forward.1
= control target key start
LH: loop header
LB: loop body
LE: loop exit
PB: predicated region body
PF: predicated region fallthrough
CT: control target
= control target key end

     0   :  { %v2089_v0 = vmov 0   ;;  %v3926_v20 = vlaneseq  ;;  %vm156_vm0 = vcmask 1046528   ;;  %vm241_vm1 = vcmask 1045504   ;;  %s2090_s20 = smov 64   ;;  %s3921_s0 = inlined_call_operand.vmem [shape: f32[2,56,1], index: 0, kind: input, shape index: {}]   ;;  %s3922_s3 = inlined_call_operand.vmem [shape: f32[8,128], index: 3, kind: input, shape index: {}]   ;;  %s3923_s1 = inlined_call_operand.vmem [shape: f32[3,64,64], index: 1, kind: input, shape index: {}]   ;;  %s3924_s2 = inlined_call_operand.vmem [shape: f32[1664,50], index: 2, kind: input, shape index: {}]   ;;  %s3925_s4 = inlined_call_operand.vmem [shape: f32[2,1,1], index: 4, kind: output, shape index: {}]  }
   0x1   :  { %2082 = vset.pattern.permute.xlu1 %v2089_v0  ;;  %2081 = vset.pattern.permute.xlu0 %v2089_v0  ;;  %v19_v1 = vld [vmem:[%s3921_s0 + $0x10] sm:$0xff]  ;;  %v17_v2 = vld [vmem:[%s3921_s0] sm:$0xff]  ;;  %v22_v3 = vld [vmem:[%s3921_s0 + $0x28] sm:$0xff]  ;;  %vm420_vm3 = vcmask 1042432   ;;  %vm421_vm4 = vcmask 1046532   ;;  %vm808_vm7 = vcmask 1041408  }
   0x2   :  { %52 = vperm.xlu1 %2082, %v19_v1   ;;  %42 = vperm.xlu0 %2081, %v17_v2   ;;  %v21_v4 = vld [vmem:[%s3921_s0 + $0x20] sm:$0xff]  ;;  %v18_v5 = vld [vmem:[%s3921_s0 + $0x8] sm:$0xff]  ;;  %v23_v6 = vld [vmem:[%s3921_s0 + $0x30] sm:$0xff]  ;;  %v2178_v24 = vshrl.u32 %v3926_v20, 7  ;;  %vm809_vm8 = vcmask 1045508   ;;  %vm549_vm10 = vcmask 523264  }
   0x3   :  { %2083 = vset.pattern.permute.xlu2 %v2089_v0  ;;  %v26_v7 = vld [vmem:[%s3921_s0 + $0x48] sm:$0xff]  ;;  %v25_v8 = vld [vmem:[%s3921_s0 + $0x40] sm:$0xff]  ;;  %v27_v9 = vld [vmem:[%s3921_s0 + $0x50] sm:$0xff]  ;;  %vm1730_vm12 = vcmask 1041409   ;;  %vm2001_vm13 = vcmask 401408   ;;  %vm2011_vm14 = vcmask 0  }
   0x4   :  { %67 = vperm.xlu2 %2083, %v22_v3   ;;  %v30_v10 = vld [vmem:[%s3921_s0 + $0x68] sm:$0xff]  ;;  %v29_v11 = vld [vmem:[%s3921_s0 + $0x60] sm:$0xff]  ;;  %v20_v12 = vld [vmem:[%s3921_s0 + $0x18] sm:$0xff]  ;;  %v2187_v33 = vadd.s32 48, %v2178_v24  ;;  %vm296_vm6 = vcmp.ge.s32.totalorder %v2178_v24, 1 }
   0x5   :  { %v28_v13 = vld [vmem:[%s3921_s0 + $0x58] sm:$0xff]  ;;  %v2161_v17 = vld [vmem:[%s3922_s3 + $0x3] ss:$0 sm:$0xff]  ;;  %v2168_v19 = vld [vmem:[%s3922_s3 + $0x2] ss:$0 sm:$0xff] }
   0x6   :  { %v24_v14 = vld [vmem:[%s3921_s0 + $0x38] sm:$0xff]  ;;  %v2174_v22 = vld [vmem:[%s3922_s3 + $0x4] ss:$0 sm:$0xff]  ;;  %vm309_vm2 = vcmp.lt.s32.totalorder %v2187_v33, 53  ;;  %v2201_v44 = vld [vmem:[%s3922_s3] ss:$0 sm:$0xff] }
   0x7   :  { %v2025_v38 = vld [vmem:[%s3923_s1 + $0x78] sm:$0xff]  ;;  %v2024_v62 = vld [vmem:[%s3923_s1 + $0x70] sm:$0xff]  ;;  %vm2261_vm5 = vmor %vm420_vm3, %vm421_vm4 }
   0x8   :  { %584 = vmatpush.msra.mxu0 %v2025_v38  ;;  %vm2485_vm9 = vmor %vm808_vm7, %vm809_vm8 }
   0xa   :  { %62 = vperm.xlu1 %2082, %v21_v4   ;;  %47 = vperm.xlu0 %2081, %v18_v5  }
   0xb   :  { %585 = vmatpush.msra.mxu0 %v2024_v62 }
   0xc   :  { %72 = vperm.xlu2 %2083, %v23_v6  }
  0x12   :  { %87 = vperm.xlu1 %2082, %v26_v7   ;;  %82 = vperm.xlu0 %2081, %v25_v8   ;;  %v2023_v7 = vld [vmem:[%s3923_s1 + $0x68] sm:$0xff] }
  0x13   :  { %586 = vmatpush.msra.mxu0 %v2023_v7 }
  0x14   :  { %92 = vperm.xlu2 %2083, %v27_v9  }
  0x1a   :  { %107 = vperm.xlu1 %2082, %v30_v10   ;;  %102 = vperm.xlu0 %2081, %v29_v11  }
  0x1c   :  { %57 = vperm.xlu2 %2083, %v20_v12  }
  0x22   :  { %97 = vperm.xlu1 %2082, %v28_v13   ;;  %77 = vperm.xlu0 %2081, %v24_v14  }
  0x5e   :  { %v68_v15 = vpop.permute.xlu2 %67 }
  0x5f   :  { %v133_v29 = vmul.f32 %v2161_v17, %v68_v15  ;;  %v218_v32 = vmul.f32 %v2174_v22, %v68_v15  ;;  %v117_v40 = vmul.f32 %v2168_v19, %v68_v15 }
  0x61   :  { %v166_v36 = vrot.slane %v133_v29, 1  ;;  %v251_v43 = vrot.slane %v218_v32, 2  ;;  %v2021_v29 = vld [vmem:[%s3923_s1 + $0x58] sm:$0xff] }
  0x66   :  { %v73_v16 = vpop.permute.xlu2 %72 }
  0x67   :  { %v134_v21 = vmul.f32 %v2161_v17, %v73_v16  ;;  %v118_v23 = vmul.f32 %v2168_v19, %v73_v16  ;;  %v219_v26 = vmul.f32 %v2174_v22, %v73_v16  ;;  %v2022_v16 = vld [vmem:[%s3923_s1 + $0x60] sm:$0xff] }
  0x68   :  { %587 = vmatpush.msra.mxu0 %v2022_v16 }
  0x69   :  { %v168_v25 = vrot.slane %v134_v21, 1  ;;  %v253_v34 = vrot.slane %v219_v26, 2 }
  0x6a   :  { %588 = vmatpush.msra.mxu0 %v2021_v29 }
  0x6b   :  { %v203_v30 = vadd.f32 %v168_v25, %v118_v23  ;;  %v169_v50 = vsel %vm156_vm0, %v166_v36, %v168_v25  ;;  %v254_v12 = vsel %vm241_vm1, %v251_v43, %v253_v34 }
  0x6c   :  { %v202_v8 = vadd.f32 %v169_v50, %v117_v40 }
  0x6d   :  { %v288_v39 = vadd.f32 %v253_v34, %v203_v30 }
  0x6e   :  { %v2163_v18 = vpop.permute.xlu2 %92  ;;  %v287_v30 = vadd.f32 %v254_v12, %v202_v8 }
  0x6f   :  { %v324_v54 = vadd.f32 %v2201_v44, %v288_v39  ;;  %v2292_v62 = vmul.f32 %v2174_v22, %v2163_v18 }
  0x71   :  { %v338_v13 = vmax.f32 %v324_v54, 0.0  ;;  %v260_v12 = vrot.slane %v2292_v62, 2 }
  0x73   :  { %v2249_v34 = vsel %vm309_vm2, %v338_v13, 0.0 }
  0x74   :  { %v53_v27 = vpop.permute.xlu1 %52  ;;  %v2181_v28 = vpop.permute.xlu0 %42 }
  0x75   :  { %v130_v31 = vmul.f32 %v2161_v17, %v53_v27  ;;  %v2190_v37 = vmul.f32 %v2174_v22, %v53_v27  ;;  %v114_v45 = vmul.f32 %v2168_v19, %v53_v27  ;;  %v128_v7 = vmul.f32 %v2161_v17, %v2181_v28 }
  0x76   :  { %v58_v35 = vpop.permute.xlu2 %57 }
  0x77   :  { %v160_v41 = vrot.slane %v130_v31, 1  ;;  %v131_v42 = vmul.f32 %v2161_v17, %v58_v35  ;;  %v245_v46 = vrot.slane %v2190_v37, 2  ;;  %v216_v47 = vmul.f32 %v2174_v22, %v58_v35 }
  0x78   :  { %v115_v55 = vmul.f32 %v2168_v19, %v58_v35 }
  0x79   :  { %v162_v51 = vrot.slane %v131_v42, 1  ;;  %v247_v56 = vrot.slane %v216_v47, 2 }
  0x7b   :  { %v163_v58 = vsel %vm156_vm0, %v160_v41, %v162_v51  ;;  %v248_v0 = vsel %vm241_vm1, %v245_v46, %v247_v56 }
  0x7c   :  { %v63_v48 = vpop.permute.xlu1 %62  ;;  %v48_v49 = vpop.permute.xlu0 %47  ;;  %v199_v63 = vadd.f32 %v163_v58, %v114_v45  ;;  %v458_v45 = vrot.slane %v2249_v34, 5 }
  0x7d   :  { %v132_v52 = vmul.f32 %v2161_v17, %v63_v48  ;;  %v217_v53 = vmul.f32 %v2174_v22, %v63_v48  ;;  %v2212_v57 = vmul.f32 %v2161_v17, %v48_v49  ;;  %v116_v59 = vmul.f32 %v2168_v19, %v63_v48 }
  0x7e   :  { %v2222_v2 = vmul.f32 %v2174_v22, %v48_v49  ;;  %v284_v9 = vadd.f32 %v248_v0, %v199_v63  ;;  %v113_v14 = vmul.f32 %v2168_v19, %v48_v49  ;;  %v3928_v49 = vrot.slane %v2249_v34, 4 }
  0x7f   :  { %v164_v60 = vrot.slane %v132_v52, 1  ;;  %v249_v61 = vrot.slane %v217_v53, 2  ;;  %v158_v1 = vrot.slane %v2212_v57, 1  ;;  %v112_v57 = vmul.f32 %v2168_v19, %v2181_v28 }
  0x80   :  { %v320_v21 = vadd.f32 %v2201_v44, %v284_v9  ;;  %v243_v26 = vrot.slane %v2222_v2, 2 }
  0x81   :  { %v165_v3 = vsel %vm156_vm0, %v162_v51, %v164_v60  ;;  %v167_v4 = vsel %vm156_vm0, %v164_v60, %v166_v36  ;;  %v250_v5 = vsel %vm241_vm1, %v247_v56, %v249_v61  ;;  %v252_v6 = vsel %vm241_vm1, %v249_v61, %v251_v43 }
  0x82   :  { %v200_v10 = vadd.f32 %v165_v3, %v115_v55  ;;  %v201_v11 = vadd.f32 %v167_v4, %v116_v59  ;;  %v161_v15 = vsel %vm156_vm0, %v158_v1, %v160_v41  ;;  %v2244_v31 = vmax.f32 %v320_v21, 0.0 }
  0x83   :  { %v198_v27 = vadd.f32 %v161_v15, %v113_v14  ;;  %v246_v39 = vsel %vm241_vm1, %v243_v26, %v245_v46  ;;  %v323_v43 = vadd.f32 %v2201_v44, %v287_v30  ;;  %v2282_v55 = vmul.f32 %v2161_v17, %v2163_v18 }
  0x84   :  { %v285_v23 = vadd.f32 %v250_v5, %v200_v10  ;;  %v286_v25 = vadd.f32 %v252_v6, %v201_v11  ;;  %v2253_v36 = vrot.slane %v2244_v31, 4  ;;  %v434_v37 = vrot.slane %v2244_v31, 5  ;;  %v88_v42 = vpop.permute.xlu1 %87  ;;  %v83_v0 = vpop.permute.xlu0 %82 }
  0x85   :  { %v283_v41 = vadd.f32 %v246_v39, %v198_v27  ;;  %v137_v54 = vmul.f32 %v2161_v17, %v88_v42  ;;  %v2286_v60 = vmax.f32 %v323_v43, 0.0  ;;  %v460_v61 = vrot.slane %v458_v45, 4 }
  0x86   :  { %v321_v32 = vadd.f32 %v2201_v44, %v285_v23  ;;  %v322_v35 = vadd.f32 %v2201_v44, %v286_v25  ;;  %v436_v47 = vrot.slane %v434_v37, 4  ;;  %v437_v48 = vrot.slane %v2253_v36, 5 }
  0x87   :  { %v319_v59 = vadd.f32 %v2201_v44, %v283_v41  ;;  %v461_v3 = vrot.slane %v3928_v49, 5  ;;  %v173_v8 = vrot.slane %v137_v54, 1  ;;  %v175_v11 = vrot.slane %v2282_v55, 1 }
  0x88   :  { %v2256_v38 = vmax.f32 %v321_v32, 0.0  ;;  %v2271_v50 = vmax.f32 %v322_v35, 0.0  ;;  %v438_v52 = vsel %vm2261_vm5, %v436_v47, %v437_v48  ;;  %v439_v53 = vrot.slane %v437_v48, 4 }
  0x89   :  { %511 = vst [vmem:[#allocation1 + $0x20] ss:$2 sm:$0xff] %v438_v52  ;;  %v2307_v10 = vmax.f32 %v319_v59, 0.0  ;;  %v222_v13 = vmul.f32 %v2174_v22, %v88_v42  ;;  %v2313_v14 = vrot.slane %v2286_v60, 4  ;;  %v462_v15 = vsel %vm2261_vm5, %v460_v61, %v461_v3 }
  0x8a   :  { %v2274_v46 = vrot.slane %v2256_v38, 4  ;;  %v440_v51 = vrot.slane %v2256_v38, 5  ;;  %v446_v6 = vrot.slane %v2271_v50, 5  ;;  %v157_v25 = vrot.slane %v128_v7, 1 }
  0x8b   :  { %v2318_v16 = vrot.slane %v2307_v10, 4  ;;  %v428_v21 = vrot.slane %v2307_v10, 5  ;;  %v176_v27 = vsel %vm156_vm0, %v173_v8, %v175_v11  ;;  %v2327_v29 = vmul.f32 %v2161_v17, %v83_v0 }
  0x8c   :  { %v442_v56 = vrot.slane %v440_v51, 4  ;;  %v443_v58 = vrot.slane %v2274_v46, 5  ;;  %v441_v63 = vsel %vm2261_vm5, %v439_v53, %v440_v51  ;;  %v2321_v23 = vpop.permute.xlu1 %107  ;;  %v2330_v30 = vmul.f32 %v2174_v22, %v83_v0  ;;  %v103_v61 = vpop.permute.xlu0 %102 }
  0x8d   :  { %513 = vst [vmem:[#allocation1 + $0x21] ss:$2 sm:$0xff] %v441_v63  ;;  %v213_v32 = vmul.f32 %v2174_v22, %v2181_v28  ;;  %v430_v35 = vrot.slane %v428_v21, 4  ;;  %v431_v39 = vrot.slane %v2318_v16, 5  ;;  %v121_v41 = vmul.f32 %v2168_v19, %v88_v42 }
  0x8e   :  { %v444_v4 = vsel %vm2261_vm5, %v442_v56, %v443_v58  ;;  %v445_v5 = vrot.slane %v443_v58, 4  ;;  %v159_v47 = vsel %vm156_vm0, %v157_v25, %v158_v1  ;;  %v258_v48 = vrot.slane %v222_v13, 2 }
  0x8f   :  { %515 = vst [vmem:[#allocation1 + $0x30] ss:$2 sm:$0xff] %v444_v4  ;;  %v171_v51 = vrot.slane %v2327_v29, 1  ;;  %v3934_v52 = vrot.slane %v2330_v30, 2  ;;  %v432_v53 = vsel %vm2261_vm5, %v430_v35, %v431_v39  ;;  %v433_v54 = vrot.slane %v431_v39, 4 }
  0x90   :  { %v447_v9 = vsel %vm2261_vm5, %v445_v5, %v446_v6  ;;  %v206_v56 = vadd.f32 %v176_v27, %v121_v41  ;;  %v120_v58 = vmul.f32 %v2168_v19, %v83_v0  ;;  %v3933_v42 = vrot.slane %v2286_v60, 5  ;;  %507 = vst [vmem:[#allocation1 + $0x10] ss:$2 sm:$0xff] %v432_v53 }
  0x91   :  { %517 = vst [vmem:[#allocation1 + $0x31] ss:$2 sm:$0xff] %v447_v9  ;;  %v455_v59 = vrot.slane %v2313_v14, 5  ;;  %v174_v1 = vsel %vm156_vm0, %v171_v51, %v173_v8  ;;  %v435_v63 = vsel %vm2261_vm5, %v433_v54, %v434_v37  ;;  %v2361_v0 = vmul.f32 %v2161_v17, %v2321_v23 }
  0x92   :  { %v205_v3 = vadd.f32 %v174_v1, %v120_v58  ;;  %v242_v4 = vrot.slane %v213_v32, 2  ;;  %v197_v5 = vadd.f32 %v159_v47, %v112_v57  ;;  %509 = vst [vmem:[#allocation1 + $0x11] ss:$2 sm:$0xff] %v435_v63  ;;  %v261_v28 = vsel %vm241_vm1, %v258_v48, %v260_v12 }
  0x93   :  { %v259_v7 = vsel %vm241_vm1, %v3934_v52, %v258_v48  ;;  %v291_v8 = vadd.f32 %v261_v28, %v206_v56  ;;  %v181_v37 = vrot.slane %v2361_v0, 1  ;;  %v2371_v13 = vmul.f32 %v2161_v17, %v103_v61  ;;  %v382_v0 = vld [vmem:[%s3923_s1 + $0x38] sm:$0xff] }
  0x94   :  { %v2338_v43 = vld.sshfl [vmem:[#allocation1 + $0x20] sm:$0xff pattern:$0x75316420]  ;;  %v290_v9 = vadd.f32 %v259_v7, %v205_v3  ;;  %v457_v25 = vrot.slane %v455_v59, 4  ;;  %v244_v27 = vsel %vm241_vm1, %v242_v4, %v243_v26  ;;  %v2381_v35 = vmul.f32 %v2174_v22, %v2321_v23  ;;  %v2384_v41 = vpop.permute.xlu1 %97  ;;  %v78_v52 = vpop.permute.xlu0 %77  ;;  %712 = vmatpush.msra.mxu1 %v382_v0 }
  0x95   :  { %526 = vst [vmem:[#allocation1 + $0x20] ss:$2 sm:$0xff] %v462_v15  ;;  %v454_v15 = vrot.slane %v3933_v42, 4  ;;  %v179_v39 = vrot.slane %v2371_v13, 1  ;;  %v282_v47 = vadd.f32 %v244_v27, %v197_v5  ;;  %v327_v48 = vadd.f32 %v2201_v44, %v291_v8  ;;  %v381_v13 = vld [vmem:[%s3923_s1 + $0x30] sm:$0xff] }
  0x96   :  { %v326_v32 = vadd.f32 %v2201_v44, %v290_v9  ;;  %v2395_v26 = vmul.f32 %v2174_v22, %v103_v61  ;;  %v124_v56 = vmul.f32 %v2168_v19, %v103_v61  ;;  %v2402_v58 = vmul.f32 %v2161_v17, %v2384_v41  ;;  %713 = vmatpush.msra.mxu1 %v381_v13 }
  0x97   :  { %v182_v2 = vsel %vm156_vm0, %v179_v39, %v181_v37  ;;  %v456_v54 = vsel %vm2261_vm5, %v454_v15, %v455_v59  ;;  %v2406_v57 = vmul.f32 %v2174_v22, %v2384_v41  ;;  %v459_v1 = vsel %vm2261_vm5, %v457_v25, %v458_v45 }
  0x98   :  { %v2387_v53 = vmax.f32 %v326_v32, 0.0  ;;  %v2412_v63 = vld.sshfl [vmem:[#allocation1 + $0x30] sm:$0xff pattern:$0x75316420]  ;;  %v266_v4 = vrot.slane %v2381_v35, 2  ;;  %v318_v5 = vadd.f32 %v2201_v44, %v282_v47  ;;  %v209_v28 = vadd.f32 %v182_v2, %v124_v56  ;;  %v2018_v56 = vld [vmem:[%s3923_s1 + $0x40] sm:$0xff] }
  0x99   :  { %v2414_v3 = vld.sshfl [vmem:[#allocation1 + $0x10] sm:$0xff pattern:$0x75316420]  ;;  %v264_v7 = vrot.slane %v2395_v26, 2  ;;  %v177_v8 = vrot.slane %v2402_v58, 1  ;;  %v2424_v45 = vmax.f32 %v327_v48, 0.0  ;;  %v122_v25 = vmul.f32 %v2168_v19, %v2163_v18 }
  0x9a   :  { %v2417_v59 = vrot.slane %v2387_v53, 4  ;;  %v3929_v61 = vrot.slane %v2387_v53, 5  ;;  %524 = vst [vmem:[#allocation1 + $0x10] ss:$2 sm:$0xff] %v456_v54  ;;  %v262_v32 = vrot.slane %v2406_v57, 2  ;;  %v2020_v47 = vld [vmem:[%s3923_s1 + $0x50] sm:$0xff] }
  0x9b   :  { %525 = vst [vmem:[#allocation1 + $0x11] ss:$2 sm:$0xff] %v459_v1  ;;  %v178_v27 = vsel %vm156_vm0, %v175_v11, %v177_v8  ;;  %v2019_v48 = vld [vmem:[%s3923_s1 + $0x48] sm:$0xff]  ;;  %v267_v55 = vsel %vm241_vm1, %v264_v7, %v266_v4  ;;  %589 = vmatpush.msra.mxu0 %v2020_v47  ;;  %v332_v11 = vmax.f32 %v318_v5, 0.0  ;;  %v2456_v1 = vrot.slane %v2424_v45, 4  ;;  %v378_v26 = vld [vmem:[%s3923_s1 + $0x18] sm:$0xff] }
  0x9c   :  { %v470_v9 = vrot.slane %v3929_v61, 4  ;;  %v3931_v15 = vrot.slane %v2417_v59, 5  ;;  %v294_v2 = vadd.f32 %v267_v55, %v209_v28  ;;  %v207_v54 = vadd.f32 %v178_v27, %v122_v25 }
  0x9d   :  { %590 = vmatpush.msra.mxu0 %v2019_v48  ;;  %v263_v5 = vsel %vm241_vm1, %v260_v12, %v262_v32  ;;  %v2469_v27 = vsel %vm296_vm6, %v332_v11, 0.0  ;;  %v3930_v47 = vrot.slane %v2456_v1, 5  ;;  %v265_v29 = vsel %vm241_vm1, %v262_v32, %v264_v7  ;;  %v377_v7 = vld [vmem:[%s3923_s1 + $0x10] sm:$0xff] }
  0x9e   :  { %v472_v18 = vsel %vm2261_vm5, %v470_v9, %v3931_v15  ;;  %v330_v9 = vadd.f32 %v2201_v44, %v294_v2  ;;  %v292_v28 = vadd.f32 %v263_v5, %v207_v54  ;;  %v2480_v55 = vrot.slane %v2469_v27, 4 }
  0x9f   :  { %529 = vst [vmem:[#allocation1 + $0x31] ss:$2 sm:$0xff] %v472_v18  ;;  %591 = vmatpush.msra.mxu0 %v2018_v56  ;;  %v479_v56 = vrot.slane %v3930_v47, 4  ;;  %v2026_v15 = vrot.slane %v2469_v27, 9  ;;  %v2062_v42 = vrot.slane %v2469_v27, 10  ;;  %v3941_v0 = vrot.slane %v2286_v60, 5 }
  0xa0   :  { %v2465_v25 = vmax.f32 %v330_v9, 0.0  ;;  %v328_v48 = vadd.f32 %v2201_v44, %v292_v28  ;;  %v425_v61 = vrot.slane %v2480_v55, 5  ;;  %v474_v57 = vrot.slane %v2424_v45, 5 }
  0xa2   :  { %v2474_v18 = vrot.slane %v2465_v25, 4  ;;  %v3927_v62 = vrot.slane %v2465_v25, 6  ;;  %v2477_v12 = vmax.f32 %v328_v48, 0.0  ;;  %v2501_v48 = vld.sshfl [vmem:[#allocation1 + $0x10] sm:$0xff pattern:$0x75316420] }
  0xa4   :  { %v882_v11 = vrot.slane %v3927_v62, 4  ;;  %v3932_v2 = vrot.slane %v2474_v18, 6  ;;  %v2492_v9 = vrot.slane %v2477_v12, 4  ;;  %v480_v5 = vrot.slane %v2477_v12, 5 }
  0xa6   :  { %v2499_v28 = vsel %vm2485_vm9, %v882_v11, %v3932_v2  ;;  %v481_v20 = vsel %vm2261_vm5, %v479_v56, %v480_v5  ;;  %v482_v62 = vrot.slane %v480_v5, 4  ;;  %v3935_v49 = vrot.slane %v2492_v9, 5 }
  0xa7   :  { %536 = vst [vmem:[#allocation1 + $0x10] ss:$2 sm:$0xff] %v481_v20  ;;  %v813_v11 = vrot.slane %v2480_v55, 6  ;;  %v2514_v2 = vrot.slane %v2271_v50, 4  ;;  %v125_v56 = vmul.f32 %v2168_v19, %v2321_v23  ;;  %v426_v5 = vsel %vm2261_vm5, %v2026_v15, %v425_v61 }
  0xa8   :  { %v484_v47 = vsel %vm2261_vm5, %v482_v62, %v3935_v49  ;;  %v427_v20 = vrot.slane %v425_v61, 4  ;;  %503 = vst [vmem:[#allocation1] ss:$2 sm:$0xff] %v426_v5  ;;  %v816_v61 = vrot.slane %v2307_v10, 6  ;;  %v119_v5 = vmul.f32 %v2168_v19, %v78_v52 }
  0xa9   :  { %537 = vst [vmem:[#allocation1 + $0x11] ss:$2 sm:$0xff] %v484_v47  ;;  %v210_v62 = vadd.f32 %v181_v37, %v125_v56  ;;  %v2529_v47 = vsel %vm2485_vm9, %v2062_v42, %v813_v11  ;;  %v449_v23 = vrot.slane %v2514_v2, 5  ;;  %v815_v15 = vrot.slane %v813_v11, 4 }
  0xaa   :  { %v429_v49 = vsel %vm2261_vm5, %v427_v20, %v428_v21  ;;  %v180_v21 = vsel %vm156_vm0, %v177_v8, %v179_v39  ;;  %v135_v37 = vmul.f32 %v2161_v17, %v78_v52  ;;  %v220_v42 = vmul.f32 %v2174_v22, %v78_v52  ;;  %v380_v20 = vld [vmem:[%s3923_s1 + $0x28] sm:$0xff] }
  0xab   :  { %505 = vst [vmem:[#allocation1 + $0x1] ss:$2 sm:$0xff] %v429_v49  ;;  %v123_v56 = vmul.f32 %v2168_v19, %v2384_v41  ;;  %v2549_v49 = vsel %vm2485_vm9, %v815_v15, %v816_v61  ;;  %v448_v39 = vrot.slane %v446_v6, 4  ;;  %v295_v17 = vadd.f32 %v266_v4, %v210_v62  ;;  %714 = vmatpush.msra.mxu1 %v380_v20  ;;  %v379_v4 = vld [vmem:[%s3923_s1 + $0x20] sm:$0xff] }
  0xac   :  { %v170_v58 = vrot.slane %v135_v37, 1  ;;  %v255_v41 = vrot.slane %v220_v42, 2  ;;  %v451_v8 = vrot.slane %v449_v23, 4  ;;  %v3942_v42 = vrot.slane %v2417_v59, 5 }
  0xad   :  { %v208_v11 = vadd.f32 %v180_v21, %v123_v56  ;;  %v450_v19 = vsel %vm2261_vm5, %v448_v39, %v449_v23  ;;  %v331_v52 = vadd.f32 %v2201_v44, %v295_v17  ;;  %715 = vmatpush.msra.mxu1 %v379_v4  ;;  %v495_v4 = vrot.slane %v2474_v18, 5 }
  0xae   :  { %v172_v6 = vsel %vm156_vm0, %v170_v58, %v171_v51  ;;  %v3940_v51 = vrot.slane %v2330_v30, 2  ;;  %v453_v21 = vsel %vm2261_vm5, %v451_v8, %v3941_v0  ;;  %v473_v56 = vrot.slane %v3942_v42, 4  ;;  %v376_v58 = vld [vmem:[%s3923_s1 + $0x8] sm:$0xff] }
  0xaf   :  { %v204_v35 = vadd.f32 %v172_v6, %v119_v5  ;;  %v293_v23 = vadd.f32 %v265_v29, %v208_v11  ;;  %716 = vmatpush.msra.mxu1 %v378_v26  ;;  %v345_v32 = vmax.f32 %v331_v52, 0.0 }
  0xb0   :  { %v2558_v22 = vld.sshfl [vmem:[#allocation1 + $0x10] sm:$0xff pattern:$0x75316420]  ;;  %v257_v15 = vsel %vm241_vm1, %v255_v41, %v3940_v51  ;;  %v476_v41 = vrot.slane %v474_v57, 4  ;;  %v475_v20 = vsel %vm2261_vm5, %v473_v56, %v474_v57 }
  0xb1   :  { %636 = vst [vmem:[#allocation1 + $0x10] ss:$2 sm:$0xff] %v2307_v10  ;;  %v289_v37 = vadd.f32 %v257_v15, %v204_v35  ;;  %717 = vmatpush.msra.mxu1 %v377_v7  ;;  %v329_v13 = vadd.f32 %v2201_v44, %v293_v23  ;;  %v2615_v11 = vsel %vm309_vm2, %v345_v32, 0.0  ;;  %v3943_v35 = vrot.slane %v2456_v1, 5 }
  0xb2   :  { %638 = vst [vmem:[#allocation1 + $0x11] ss:$2 sm:$0xff] %v2318_v16  ;;  %v518_v62 = vld.sshfl [vmem:[#allocation1] sm:$0xff pattern:$0x75316420]  ;;  %v419_v29 = vrot.slane %v2615_v11, 4 }
  0xb3   :  { %522 = vst [vmem:[#allocation1] ss:$2 sm:$0xff] %v450_v19  ;;  %2028 = vmatmul.msk.f32.vlgmr.msra.gmra.mxu0 %vm549_vm10, %v518_v62  ;;  %v325_v30 = vadd.f32 %v2201_v44, %v289_v37  ;;  %718 = vmatpush.msra.mxu1 %v376_v58  ;;  %v375_v44 = vld [vmem:[%s3923_s1] sm:$0xff]  ;;  %v2622_v6 = vmax.f32 %v329_v13, 0.0  ;;  %v478_v33 = vsel %vm2261_vm5, %v476_v41, %v3943_v35  ;;  %v498_v62 = vrot.slane %v2615_v11, 5 }
  0xb4   :  { %523 = vst [vmem:[#allocation1 + $0x1] ss:$2 sm:$0xff] %v453_v21  ;;  %v497_v21 = vrot.slane %v495_v4, 4  ;;  %v3944_v37 = vrot.slane %v2387_v53, 5  ;;  %v819_v7 = vrot.slane %v2318_v16, 6  ;;  %v3945_v32 = vrot.slane %v2492_v9, 5 }
  0xb5   :  { %v339_v17 = vmax.f32 %v325_v30, 0.0  ;;  %719 = vmatpush.msra.mxu1 %v375_v44  ;;  %v2640_v15 = vrot.slane %v2622_v6, 4  ;;  %v486_v0 = vrot.slane %v2622_v6, 5  ;;  %v500_v57 = vrot.slane %v498_v62, 4 }
  0xb6   :  { %v501_v30 = vrot.slane %v419_v29, 5  ;;  %v485_v42 = vrot.slane %v3945_v32, 4  ;;  %v499_v58 = vsel %vm2261_vm5, %v497_v21, %v498_v62  ;;  %v818_v16 = vrot.slane %v816_v61, 4 }
  0xb7   :  { %v2608_v8 = vsel %vm296_vm6, %v339_v17, 0.0  ;;  %v488_v56 = vrot.slane %v486_v0, 4  ;;  %v489_v13 = vrot.slane %v2640_v15, 5  ;;  %v492_v17 = vrot.slane %v2465_v25, 5 }
  0xb8   :  { %v2618_v5 = vrot.slane %v2608_v8, 4  ;;  %v2027_v19 = vrot.slane %v2608_v8, 9  ;;  %v502_v44 = vsel %vm2261_vm5, %v500_v57, %v501_v30  ;;  %v487_v35 = vsel %vm2261_vm5, %v485_v42, %v486_v0  ;;  %v2060_v30 = vld [vmem:[%s3923_s1 + $0xb0] sm:$0xff]  ;;  %v2059_v42 = vld [vmem:[%s3923_s1 + $0xa8] sm:$0xff] }
  0xb9   :  { %v2599_v39 = vld.sshfl [vmem:[#allocation1 + $0x10] sm:$0xff pattern:$0x75316420]  ;;  %v494_v10 = vrot.slane %v492_v17, 4  ;;  %v840_v61 = vrot.slane %v2286_v60, 6  ;;  %v820_v62 = vsel %vm2485_vm9, %v818_v16, %v819_v7  ;;  %v846_v32 = vrot.slane %v2249_v34, 6 }
  0xba   :  { %653 = vst [vmem:[#allocation1 + $0x10] ss:$2 sm:$0xff] %v2286_v60  ;;  %v465_v52 = vrot.slane %v2618_v5, 5  ;;  %v2056_v16 = vld [vmem:[%s3923_s1 + $0x90] sm:$0xff] }
  0xbb   :  { %654 = vst [vmem:[#allocation1 + $0x11] ss:$2 sm:$0xff] %v2313_v14  ;;  %v2624_v24 = vld.sshfl [vmem:[#allocation1] sm:$0xff pattern:$0x75316420]  ;;  %2029 = vmatmul.msk.f32.gmra.mxu0 %vm549_vm10, %v2414_v3 }
  0xbc   :  { %534 = vst [vmem:[#allocation1] ss:$2 sm:$0xff] %v475_v20  ;;  %v466_v3 = vsel %vm2261_vm5, %v2027_v19, %v465_v52  ;;  %v467_v51 = vrot.slane %v465_v52, 4  ;;  %v821_v20 = vrot.slane %v819_v7, 4  ;;  %v491_v19 = vrot.slane %v489_v13, 4 }
  0xbd   :  { %535 = vst [vmem:[#allocation1 + $0x1] ss:$2 sm:$0xff] %v478_v33  ;;  %v490_v33 = vsel %vm2261_vm5, %v488_v56, %v489_v13  ;;  %v822_v52 = vrot.slane %v2244_v31, 6  ;;  %v842_v7 = vrot.slane %v840_v61, 4  ;;  %v2058_v56 = vld [vmem:[%s3923_s1 + $0xa0] sm:$0xff] }
  0xbe   :  { %527 = vst [vmem:[#allocation1 + $0x21] ss:$2 sm:$0xff] %v466_v3  ;;  %v469_v26 = vsel %vm2261_vm5, %v467_v51, %v3944_v37  ;;  %v843_v51 = vrot.slane %v2313_v14, 6  ;;  %v493_v37 = vsel %vm2261_vm5, %v491_v19, %v492_v17  ;;  %v496_v14 = vsel %vm2261_vm5, %v494_v10, %v495_v4 }
  0xbf   :  { %528 = vst [vmem:[#allocation1 + $0x30] ss:$2 sm:$0xff] %v469_v26  ;;  %v823_v0 = vsel %vm2485_vm9, %v821_v20, %v822_v52  ;;  %v2061_v26 = vld [vmem:[%s3923_s1 + $0xb8] sm:$0xff]  ;;  %v868_v17 = vrot.slane %v2477_v12, 6  ;;  %v865_v20 = vrot.slane %v2456_v1, 6  ;;  %v871_v19 = vrot.slane %v2492_v9, 6 }
  0xc0   :  { %971 = vmatpush.msra.mxu2 %v2061_v26 }
  0xc2   :  { %v2643_v23 = vld.sshfl [vmem:[#allocation1 + $0x10] sm:$0xff pattern:$0x75316420]  ;;  %972 = vmatpush.msra.mxu2 %v2060_v30  ;;  %v825_v30 = vrot.slane %v2253_v36, 6 }
  0xc3   :  { %665 = vst [vmem:[#allocation1 + $0x10] ss:$2 sm:$0xff] %v2456_v1  ;;  %2030 = vmatmul.msk.f32.gmra.mxu0 %vm549_vm10, %v2338_v43 }
  0xc4   :  { %666 = vst [vmem:[#allocation1 + $0x11] ss:$2 sm:$0xff] %v2477_v12  ;;  %v2662_v41 = vld.sshfl [vmem:[#allocation1] sm:$0xff pattern:$0x75316420]  ;;  %973 = vmatpush.msra.mxu2 %v2059_v42  ;;  %v2055_v12 = vld [vmem:[%s3923_s1 + $0x88] sm:$0xff] }
  0xc5   :  { %546 = vst [vmem:[#allocation1] ss:$2 sm:$0xff] %v499_v58  ;;  %v2670_v43 = vld.sshfl [vmem:[#allocation1 + $0x20] sm:$0xff pattern:$0x75316420]  ;;  %v2057_v58 = vld [vmem:[%s3923_s1 + $0x98] sm:$0xff] }
  0xc6   :  { %547 = vst [vmem:[#allocation1 + $0x1] ss:$2 sm:$0xff] %v502_v44  ;;  %v2685_v21 = vld.sshfl [vmem:[#allocation1 + $0x30] sm:$0xff pattern:$0x75316420]  ;;  %974 = vmatpush.msra.mxu2 %v2058_v56 }
  0xc7   :  { %538 = vst [vmem:[#allocation1 + $0x20] ss:$2 sm:$0xff] %v487_v35  ;;  %v870_v35 = vrot.slane %v868_v17, 4 }
  0xc8   :  { %539 = vst [vmem:[#allocation1 + $0x21] ss:$2 sm:$0xff] %v490_v33  ;;  %975 = vmatpush.msra.mxu2 %v2057_v58  ;;  %v2054_v33 = vld [vmem:[%s3923_s1 + $0x80] sm:$0xff] }
  0xc9   :  { %540 = vst [vmem:[#allocation1 + $0x30] ss:$2 sm:$0xff] %v493_v37  ;;  %v872_v37 = vsel %vm2485_vm9, %v870_v35, %v871_v19 }
  0xca   :  { %541 = vst [vmem:[#allocation1 + $0x31] ss:$2 sm:$0xff] %v496_v14  ;;  %976 = vmatpush.msra.mxu2 %v2056_v16 }
  0xcb   :  { %v2678_v3 = vld.sshfl [vmem:[#allocation1 + $0x10] sm:$0xff pattern:$0x75316420]  ;;  %2031 = vmatmul.msk.f32.gmra.mxu0 %vm549_vm10, %v2412_v63  ;;  %v845_v63 = vrot.slane %v843_v51, 4 }
  0xcc   :  { %895 = vst [vmem:[#allocation1 + $0x10] ss:$2 sm:$0xff] %v820_v62  ;;  %977 = vmatpush.msra.mxu2 %v2055_v12  ;;  %v867_v62 = vrot.slane %v865_v20, 4 }
  0xcd   :  { %897 = vst [vmem:[#allocation1 + $0x11] ss:$2 sm:$0xff] %v823_v0  ;;  %v2696_v57 = vld.sshfl [vmem:[#allocation1] sm:$0xff pattern:$0x75316420]  ;;  %v847_v13 = vsel %vm2485_vm9, %v845_v63, %v846_v32  ;;  %v828_v63 = vrot.slane %v2256_v38, 6 }
  0xce   :  { %632 = vst [vmem:[#allocation1] ss:$2 sm:$0xff] %v2469_v27  ;;  %v844_v27 = vsel %vm2485_vm9, %v842_v7, %v843_v51  ;;  %978 = vmatpush.msra.mxu2 %v2054_v33  ;;  %v869_v51 = vsel %vm2485_vm9, %v867_v62, %v868_v17  ;;  %v827_v7 = vrot.slane %v825_v30, 4  ;;  %v3946_v17 = vrot.slane %v2249_v34, 4 }
  0xcf   :  { %634 = vst [vmem:[#allocation1 + $0x1] ss:$2 sm:$0xff] %v2480_v55  ;;  %v2706_v4 = vld.sshfl [vmem:[#allocation1 + $0x20] sm:$0xff pattern:$0x75316420]  ;;  %v837_v33 = vrot.slane %v2514_v2, 6 }
  0xd0   :  { %640 = vst [vmem:[#allocation1 + $0x20] ss:$2 sm:$0xff] %v2244_v31  ;;  %v849_v58 = vrot.slane %v3946_v17, 6 }
  0xd1   :  { %642 = vst [vmem:[#allocation1 + $0x21] ss:$2 sm:$0xff] %v2253_v36  ;;  %v2733_v44 = vld.sshfl [vmem:[#allocation1 + $0x30] sm:$0xff pattern:$0x75316420]  ;;  %v831_v36 = vrot.slane %v2274_v46, 6 }
  0xd2   :  { %644 = vst [vmem:[#allocation1 + $0x30] ss:$2 sm:$0xff] %v2256_v38  ;;  %v829_v38 = vsel %vm2485_vm9, %v827_v7, %v828_v63 }
  0xd3   :  { %2032 = vmatmul.msk.f32.gmra.mxu0 %vm549_vm10, %v2624_v24  ;;  %646 = vst [vmem:[#allocation1 + $0x31] ss:$2 sm:$0xff] %v2274_v46  ;;  %v833_v46 = vrot.slane %v831_v36, 4 }
  0xd4   :  { %v2718_v55 = vld.sshfl [vmem:[#allocation1 + $0x10] sm:$0xff pattern:$0x75316420] }
  0xd5   :  { %912 = vst [vmem:[#allocation1 + $0x10] ss:$2 sm:$0xff] %v844_v27  ;;  %v834_v27 = vrot.slane %v2271_v50, 6 }
  0xd6   :  { %913 = vst [vmem:[#allocation1 + $0x11] ss:$2 sm:$0xff] %v847_v13  ;;  %v647_v24 = vld.sshfl [vmem:[#allocation1] sm:$0xff pattern:$0x75316420]  ;;  %v848_v13 = vrot.slane %v846_v32, 4 }
  0xd7   :  { %651 = vst [vmem:[#allocation1] ss:$2 sm:$0xff] %v2271_v50  ;;  %2041 = vmatmul.msk.f32.vlgmr.msra.gmra.mxu1 %vm549_vm10, %v647_v24  ;;  %v853_v24 = vrot.slane %v2618_v5, 6  ;;  %v856_v50 = vrot.slane %v2387_v53, 6 }
  0xd8   :  { %652 = vst [vmem:[#allocation1 + $0x1] ss:$2 sm:$0xff] %v2514_v2  ;;  %v649_v10 = vld.sshfl [vmem:[#allocation1 + $0x20] sm:$0xff pattern:$0x75316420]  ;;  %v850_v32 = vsel %vm2485_vm9, %v848_v13, %v849_v58  ;;  %v873_v2 = vrot.slane %v871_v19, 4 }
  0xd9   :  { %655 = vst [vmem:[#allocation1 + $0x20] ss:$2 sm:$0xff] %v2249_v34  ;;  %v2063_v34 = vrot.slane %v2608_v8, 10  ;;  %v858_v62 = vrot.slane %v856_v50, 4  ;;  %v862_v19 = vrot.slane %v2424_v45, 6 }
  0xda   :  { %656 = vst [vmem:[#allocation1 + $0x21] ss:$2 sm:$0xff] %v2608_v8  ;;  %v650_v26 = vld.sshfl [vmem:[#allocation1 + $0x30] sm:$0xff pattern:$0x75316420]  ;;  %v874_v8 = vrot.slane %v2622_v6, 6 }
  0xdb   :  { %2033 = vmatmul.msk.f32.gmra.mxu0 %vm549_vm10, %v2501_v48  ;;  %657 = vst [vmem:[#allocation1 + $0x30] ss:$2 sm:$0xff] %v2618_v5 }
  0xdc   :  { %658 = vst [vmem:[#allocation1 + $0x31] ss:$2 sm:$0xff] %v2387_v53  ;;  %v854_v53 = vsel %vm2485_vm9, %v2063_v34, %v853_v24 }
  0xdd   :  { %v2756_v0 = vld.sshfl [vmem:[#allocation1 + $0x10] sm:$0xff pattern:$0x75316420] }
  0xde   :  { %924 = vst [vmem:[#allocation1 + $0x10] ss:$2 sm:$0xff] %v869_v51  ;;  %v836_v51 = vrot.slane %v834_v27, 4 }
  0xdf   :  { %925 = vst [vmem:[#allocation1 + $0x11] ss:$2 sm:$0xff] %v872_v37  ;;  %v659_v14 = vld.sshfl [vmem:[#allocation1] sm:$0xff pattern:$0x75316420]  ;;  %2042 = vmatmul.msk.f32.gmra.mxu1 %vm549_vm10, %v2599_v39  ;;  %v824_v39 = vrot.slane %v822_v52, 4 }
  0xe0   :  { %663 = vst [vmem:[#allocation1] ss:$2 sm:$0xff] %v2417_v59  ;;  %v830_v52 = vrot.slane %v828_v63, 4  ;;  %v839_v37 = vrot.slane %v837_v33, 4 }
  0xe1   :  { %664 = vst [vmem:[#allocation1 + $0x1] ss:$2 sm:$0xff] %v2424_v45  ;;  %v2768_v48 = vld.sshfl [vmem:[#allocation1 + $0x20] sm:$0xff pattern:$0x75316420]  ;;  %v826_v31 = vsel %vm2485_vm9, %v824_v39, %v825_v30  ;;  %v876_v30 = vrot.slane %v874_v8, 4 }
  0xe2   :  { %667 = vst [vmem:[#allocation1 + $0x20] ss:$2 sm:$0xff] %v2492_v9  ;;  %v832_v16 = vsel %vm2485_vm9, %v830_v52, %v831_v36  ;;  %v841_v9 = vsel %vm2485_vm9, %v839_v37, %v840_v61  ;;  %v864_v39 = vrot.slane %v862_v19, 4 }
  0xe3   :  { %668 = vst [vmem:[#allocation1 + $0x21] ss:$2 sm:$0xff] %v2622_v6  ;;  %2034 = vmatmul.msk.f32.gmra.mxu0 %vm549_vm10, %v2670_v43  ;;  %v2776_v42 = vld.sshfl [vmem:[#allocation1 + $0x30] sm:$0xff pattern:$0x75316420]  ;;  %v838_v6 = vsel %vm2485_vm9, %v836_v51, %v837_v33 }
  0xe4   :  { %669 = vst [vmem:[#allocation1 + $0x30] ss:$2 sm:$0xff] %v2640_v15 }
  0xe5   :  { %670 = vst [vmem:[#allocation1 + $0x31] ss:$2 sm:$0xff] %v2465_v25 }
  0xe7   :  { %2043 = vmatmul.msk.f32.gmra.mxu1 %vm549_vm10, %v649_v10  ;;  %v855_v10 = vrot.slane %v853_v24, 4 }
  0xe8   :  { %v2783_v56 = vld.sshfl [vmem:[#allocation1] sm:$0xff pattern:$0x75316420] }
  0xe9   :  { %675 = vst [vmem:[#allocation1] ss:$2 sm:$0xff] %v2474_v18 }
  0xea   :  { %676 = vst [vmem:[#allocation1 + $0x1] ss:$2 sm:$0xff] %v2615_v11  ;;  %v2790_v43 = vld.sshfl [vmem:[#allocation1 + $0x20] sm:$0xff pattern:$0x75316420] }
  0xeb   :  { %901 = vst [vmem:[#allocation1 + $0x21] ss:$2 sm:$0xff] %v829_v38  ;;  %2035 = vmatmul.msk.f32.gmra.mxu0 %vm549_vm10, %v2685_v21  ;;  %v835_v21 = vsel %vm2485_vm9, %v833_v46, %v834_v27 }
  0xec   :  { %899 = vst [vmem:[#allocation1 + $0x20] ss:$2 sm:$0xff] %v826_v31  ;;  %v2804_v12 = vld.sshfl [vmem:[#allocation1 + $0x30] sm:$0xff pattern:$0x75316420] }
  0xed   :  { %903 = vst [vmem:[#allocation1 + $0x30] ss:$2 sm:$0xff] %v832_v16 }
  0xee   :  { %905 = vst [vmem:[#allocation1 + $0x31] ss:$2 sm:$0xff] %v835_v21 }
  0xef   :  { %2044 = vmatmul.msk.f32.gmra.mxu1 %vm549_vm10, %v650_v26 }
  0xf1   :  { %v2810_v35 = vld.sshfl [vmem:[#allocation1] sm:$0xff pattern:$0x75316420] }
  0xf2   :  { %891 = vst [vmem:[#allocation1] ss:$2 sm:$0xff] %v2529_v47  ;;  %v859_v47 = vrot.slane %v2417_v59, 6  ;;  %v877_v59 = vrot.slane %v2640_v15, 6  ;;  %v875_v15 = vsel %vm2485_vm9, %v873_v2, %v874_v8 }
  0xf3   :  { %893 = vst [vmem:[#allocation1 + $0x1] ss:$2 sm:$0xff] %v2549_v49  ;;  %2036 = vmatmul.msk.f32.gmra.mxu0 %vm549_vm10, %v2662_v41  ;;  %v908_v5 = vld.sshfl [vmem:[#allocation1 + $0x20] sm:$0xff pattern:$0x75316420]  ;;  %v857_v49 = vsel %vm2485_vm9, %v855_v10, %v856_v50 }
  0xf4   :  { %914 = vst [vmem:[#allocation1 + $0x20] ss:$2 sm:$0xff] %v850_v32  ;;  %v860_v26 = vsel %vm2485_vm9, %v858_v62, %v859_v47  ;;  %v878_v63 = vsel %vm2485_vm9, %v876_v30, %v877_v59  ;;  %v879_v60 = vrot.slane %v877_v59, 4  ;;  %v861_v61 = vrot.slane %v859_v47, 4 }
  0xf5   :  { %915 = vst [vmem:[#allocation1 + $0x21] ss:$2 sm:$0xff] %v854_v53  ;;  %v909_v41 = vld.sshfl [vmem:[#allocation1 + $0x30] sm:$0xff pattern:$0x75316420] }
  0xf6   :  { %916 = vst [vmem:[#allocation1 + $0x30] ss:$2 sm:$0xff] %v857_v49  ;;  %v863_v38 = vsel %vm2485_vm9, %v861_v61, %v862_v19 }
  0xf7   :  { %2045 = vmatmul.msk.f32.gmra.mxu1 %vm549_vm10, %v659_v14  ;;  %917 = vst [vmem:[#allocation1 + $0x31] ss:$2 sm:$0xff] %v860_v26 }
  0xfa   :  { %v906_v7 = vld.sshfl [vmem:[#allocation1] sm:$0xff pattern:$0x75316420] }
  0xfb   :  { %2064 = vmatmul.msk.f32.vlgmr.msra.gmra.mxu2 %vm549_vm10, %v906_v7  ;;  %910 = vst [vmem:[#allocation1] ss:$2 sm:$0xff] %v838_v6  ;;  %2037 = vmatmul.msk.f32.gmra.mxu0 %vm549_vm10, %v2558_v22  ;;  %v3947_v22 = vrot.slane %v2465_v25, 6  ;;  %v866_v25 = vsel %vm2485_vm9, %v864_v39, %v865_v20 }
  0xfc   :  { %911 = vst [vmem:[#allocation1 + $0x1] ss:$2 sm:$0xff] %v841_v9  ;;  %v920_v14 = vld.sshfl [vmem:[#allocation1 + $0x20] sm:$0xff pattern:$0x75316420] }
  0xfd   :  { %926 = vst [vmem:[#allocation1 + $0x20] ss:$2 sm:$0xff] %v875_v15  ;;  %v881_v45 = vsel %vm2485_vm9, %v879_v60, %v3947_v22 }
  0xfe   :  { %927 = vst [vmem:[#allocation1 + $0x21] ss:$2 sm:$0xff] %v878_v63  ;;  %v921_v36 = vld.sshfl [vmem:[#allocation1 + $0x30] sm:$0xff pattern:$0x75316420] }
  0xff   :  { %2046 = vmatmul.msk.f32.gmra.mxu1 %vm549_vm10, %v2643_v23  ;;  %928 = vst [vmem:[#allocation1 + $0x30] ss:$2 sm:$0xff] %v881_v45  ;;  %v886_v23 = vrot.slane %v2615_v11, 6 }
 0x100   :  { %929 = vst [vmem:[#allocation1 + $0x31] ss:$2 sm:$0xff] %v2499_v28 }
 0x101   :  { %v888_v46 = vrot.slane %v886_v23, 4 }
 0x103   :  { %2065 = vmatmul.msk.f32.gmra.mxu2 %vm549_vm10, %v2718_v55  ;;  %2038 = vmatmul.msk.f32.gmra.mxu0 %vm549_vm10, %v2706_v4  ;;  %v918_v31 = vld.sshfl [vmem:[#allocation1] sm:$0xff pattern:$0x75316420]  ;;  %v3948_v55 = vrot.slane %v2474_v18, 6  ;;  %v889_v4 = vrot.slane %v419_v29, 6 }
 0x104   :  { %922 = vst [vmem:[#allocation1] ss:$2 sm:$0xff] %v863_v38  ;;  %v931_v18 = vld.sshfl [vmem:[#allocation1 + $0x10] sm:$0xff pattern:$0x75316420] }
 0x105   :  { %923 = vst [vmem:[#allocation1 + $0x1] ss:$2 sm:$0xff] %v866_v25  ;;  %v885_v52 = vrot.slane %v3948_v55, 4  ;;  %v890_v20 = vsel %vm2485_vm9, %v888_v46, %v889_v4  ;;  %v932_v54 = vld.sshfl [vmem:[#allocation1 + $0x20] sm:$0xff pattern:$0x75316420] }
 0x107   :  { %2047 = vmatmul.msk.f32.gmra.mxu1 %vm549_vm10, %v2768_v48  ;;  %v887_v1 = vsel %vm2485_vm9, %v885_v52, %v886_v23  ;;  %v933_v11 = vld.sshfl [vmem:[#allocation1 + $0x30] sm:$0xff pattern:$0x75316420] }
 0x10b   :  { %2066 = vmatmul.msk.f32.gmra.mxu2 %vm549_vm10, %v908_v5  ;;  %2039 = vmatmul.msk.f32.gmra.mxu0 %vm549_vm10, %v2733_v44 }
 0x10c   :  { %v930_v28 = vld.sshfl [vmem:[#allocation1] sm:$0xff pattern:$0x75316420] }
 0x10d   :  { %934 = vst [vmem:[#allocation1] ss:$2 sm:$0xff] %v887_v1 }
 0x10e   :  { %935 = vst [vmem:[#allocation1 + $0x1] ss:$2 sm:$0xff] %v890_v20 }
 0x10f   :  { %2048 = vmatmul.msk.f32.gmra.mxu1 %vm549_vm10, %v2776_v42 }
 0x113   :  { %2067 = vmatmul.msk.f32.gmra.mxu2 %vm549_vm10, %v909_v41  ;;  %2040 = vmatmul.msk.f32.gmra.mxu0 %vm549_vm10, %v2696_v57 }
 0x115   :  { %v936_v29 = vld.sshfl [vmem:[#allocation1] sm:$0xff pattern:$0x75316420] }
 0x117   :  { %2049 = vmatmul.msk.f32.gmra.mxu1 %vm549_vm10, %v2783_v56 }
 0x11b   :  { %2068 = vmatmul.msk.f32.gmra.mxu2 %vm549_vm10, %v918_v31 }
 0x11f   :  { %2050 = vmatmul.msk.f32.gmra.mxu1 %vm549_vm10, %v2678_v3 }
 0x123   :  { %2069 = vmatmul.msk.f32.gmra.mxu2 %vm549_vm10, %v2756_v0 }
 0x127   :  { %2051 = vmatmul.msk.f32.gmra.mxu1 %vm549_vm10, %v2790_v43  ;;  %v2905_v43 = vld [vmem:[%s3922_s3 + $0x1] ss:$0 sm:$0xff] }
 0x12b   :  { %2070 = vmatmul.msk.f32.gmra.mxu2 %vm549_vm10, %v920_v14 }
 0x12f   :  { %2052 = vmatmul.msk.f32.gmra.mxu1 %vm549_vm10, %v2804_v12  ;;  %v2908_v12 = vrot.slane %v2905_v43, 4 }
 0x130   :  { %v593_v57 = vpop.f32.mrf.mxu0 }
 0x133   :  { %2071 = vmatmul.msk.f32.gmra.mxu2 %vm549_vm10, %v921_v36 }
 0x137   :  { %2053 = vmatmul.msk.f32.gmra.mxu1 %vm549_vm10, %v2810_v35 }
 0x138   :  { %v596_v0 = vpop.f32.mrf.mxu0 }
 0x13b   :  { %2072 = vmatmul.msk.f32.gmra.mxu2 %vm549_vm10, %v930_v28 }
 0x140   :  { %v599_v42 = vpop.f32.mrf.mxu0 }
 0x143   :  { %2073 = vmatmul.msk.f32.gmra.mxu2 %vm549_vm10, %v931_v18 }
 0x148   :  { %v602_v21 = vpop.f32.mrf.mxu0 }
 0x14b   :  { %2074 = vmatmul.msk.f32.gmra.mxu2 %vm549_vm10, %v932_v54 }
 0x150   :  { %v2917_v41 = vpop.f32.mrf.mxu0 }
 0x153   :  { %2075 = vmatmul.msk.f32.gmra.mxu2 %vm549_vm10, %v933_v11 }
 0x154   :  { %v721_v3 = vpop.f32.mrf.mxu1 }
 0x155   :  { %v722_v56 = vadd.f32 %v721_v3, %v593_v57 }
 0x157   :  { %v773_v17 = vrot.slane %v722_v56, 4 }
 0x158   :  { %v2937_v28 = vpop.f32.mrf.mxu0 }
 0x15b   :  { %2076 = vmatmul.msk.f32.gmra.mxu2 %vm549_vm10, %v936_v29 }
 0x15c   :  { %v724_v44 = vpop.f32.mrf.mxu1 }
 0x15d   :  { %v725_v35 = vadd.f32 %v724_v44, %v596_v0 }
 0x15f   :  { %v774_v5 = vrot.slane %v725_v35, 4 }
 0x164   :  { %v727_v48 = vpop.f32.mrf.mxu1 }
 0x165   :  { %v728_v26 = vadd.f32 %v727_v48, %v599_v42 }
 0x167   :  { %v775_v15 = vrot.slane %v728_v26, 4 }
 0x16c   :  { %v730_v27 = vpop.f32.mrf.mxu1 }
 0x16d   :  { %v731_v25 = vadd.f32 %v730_v27, %v602_v21 }
 0x16f   :  { %v776_v11 = vrot.slane %v731_v25, 4 }
 0x174   :  { %v2912_v51 = vpop.f32.mrf.mxu1 }
 0x17c   :  { %v2929_v23 = vpop.f32.mrf.mxu1 }
 0x17e   :  { %v980_v13 = vpop.f32.mrf.mxu2 }
 0x17f   :  { %v1032_v58 = vrot.slane %v980_v13, 4  ;;  %v1058_v16 = vadd.f32 %v980_v13, %v722_v56 }
 0x181   :  { %v1059_v24 = vadd.f32 %v1032_v58, %v773_v17  ;;  %v1088_v50 = vadd.f32 %v2905_v43, %v1058_v16 }
 0x183   :  { %v1089_v34 = vadd.f32 %v2908_v12, %v1059_v24  ;;  %v1114_v32 = vmax.f32 %v1088_v50, 0.0 }
 0x184   :  { %v739_v50 = vpop.f32.mrf.mxu1 }
 0x185   :  { %v1115_v33 = vmax.f32 %v1089_v34, 0.0  ;;  %v2077_v10 = vrot.slane %v1114_v32, 9 }
 0x186   :  { %v983_v53 = vpop.f32.mrf.mxu2 }
 0x187   :  { %v1168_v62 = vrot.slane %v1115_v33, 5  ;;  %v1033_v47 = vrot.slane %v983_v53, 4  ;;  %v1060_v8 = vadd.f32 %v983_v53, %v725_v35 }
 0x189   :  { %v1061_v37 = vadd.f32 %v1033_v47, %v774_v5  ;;  %v1090_v2 = vadd.f32 %v2905_v43, %v1060_v8  ;;  %v1169_v49 = vsel %vm2261_vm5, %v2077_v10, %v1168_v62  ;;  %v1170_v14 = vrot.slane %v1168_v62, 4 }
 0x18a   :  { %v2919_v30 = vmax.f32 %v1114_v32, %v1169_v49 }
 0x18b   :  { %v1091_v59 = vadd.f32 %v2908_v12, %v1061_v37  ;;  %v1116_v6 = vmax.f32 %v1090_v2, 0.0 }
 0x18c   :  { %v1296_v7 = vperm.slane %v2919_v30, 2 }
 0x18d   :  { %v1117_v9 = vmax.f32 %v1091_v59, 0.0  ;;  %v1171_v19 = vrot.slane %v1116_v6, 5  ;;  %v742_v59 = vpop.f32.mrf.mxu1 }
 0x18e   :  { %1298 = vrot.lane.b32.xlu2 %v1296_v7, %s2090_s20  ;;  %v986_v63 = vpop.f32.mrf.mxu2 }
 0x18f   :  { %v1173_v60 = vrot.slane %v1171_v19, 4  ;;  %v1174_v61 = vrot.slane %v1117_v9, 5  ;;  %v1034_v39 = vrot.slane %v986_v63, 4  ;;  %v1062_v22 = vadd.f32 %v986_v63, %v728_v26 }
 0x190   :  { %v1172_v45 = vsel %vm2261_vm5, %v1170_v14, %v1171_v19 }
 0x191   :  { %v1063_v36 = vadd.f32 %v1034_v39, %v775_v15  ;;  %v1092_v38 = vadd.f32 %v2905_v43, %v1062_v22  ;;  %v2927_v31 = vmax.f32 %v1115_v33, %v1172_v45  ;;  %v1175_v55 = vsel %vm2261_vm5, %v1173_v60, %v1174_v61  ;;  %v611_v33 = vpop.f32.mrf.mxu0 }
 0x192   :  { %v2935_v1 = vmax.f32 %v1116_v6, %v1175_v55  ;;  %v1176_v29 = vrot.slane %v1174_v61, 4 }
 0x193   :  { %v1093_v52 = vadd.f32 %v2908_v12, %v1063_v36  ;;  %v1118_v46 = vmax.f32 %v1092_v38, 0.0  ;;  %v1314_v4 = vperm.slane %v2927_v31, 2 }
 0x194   :  { %v1328_v54 = vperm.slane %v2935_v1, 2 }
 0x195   :  { %v1119_v20 = vmax.f32 %v1093_v52, 0.0  ;;  %v1177_v18 = vrot.slane %v1118_v46, 5  ;;  %1316 = vrot.lane.b32.xlu1 %v1314_v4, %s2090_s20  ;;  %v745_v63 = vpop.f32.mrf.mxu1 }
 0x196   :  { %v989_v3 = vpop.f32.mrf.mxu2  ;;  %1330 = vrot.lane.b32.xlu0 %v1328_v54, %s2090_s20 }
 0x197   :  { %v1179_v57 = vrot.slane %v1177_v18, 4  ;;  %v1180_v44 = vrot.slane %v1119_v20, 5  ;;  %v1035_v0 = vrot.slane %v989_v3, 4  ;;  %v1064_v48 = vadd.f32 %v989_v3, %v731_v25 }
 0x198   :  { %v1178_v42 = vsel %vm2261_vm5, %v1176_v29, %v1177_v18 }
 0x199   :  { %v1065_v56 = vadd.f32 %v1035_v0, %v776_v11  ;;  %v1094_v27 = vadd.f32 %v2905_v43, %v1064_v48  ;;  %v2945_v13 = vmax.f32 %v1117_v9, %v1178_v42  ;;  %v1181_v17 = vsel %vm2261_vm5, %v1179_v57, %v1180_v44  ;;  %v614_v7 = vpop.f32.mrf.mxu0 }
 0x19a   :  { %v2953_v24 = vmax.f32 %v1118_v46, %v1181_v17  ;;  %v1182_v5 = vrot.slane %v1180_v44, 4  ;;  %v2980_v9 = vadd.f32 %v739_v50, %v611_v33  ;;  %v743_v39 = vadd.f32 %v742_v59, %v614_v7 }
 0x19b   :  { %v2950_v58 = vadd.f32 %v2908_v12, %v1065_v56  ;;  %v1120_v16 = vmax.f32 %v1094_v27, 0.0  ;;  %v1342_v21 = vperm.slane %v2945_v13, 2 }
 0x19c   :  { %v1356_v32 = vperm.slane %v2953_v24, 2  ;;  %v779_v14 = vrot.slane %v2980_v9, 4  ;;  %v780_v36 = vrot.slane %v743_v39, 4 }
 0x19d   :  { %v1121_v35 = vmax.f32 %v2950_v58, 0.0  ;;  %v1183_v34 = vrot.slane %v1120_v16, 5  ;;  %1344 = vrot.lane.b32.xlu2 %v1342_v21, %s2090_s20  ;;  %v748_v4 = vpop.f32.mrf.mxu1 }
 0x19e   :  { %v2958_v53 = vpop.f32.mrf.mxu2  ;;  %1358 = vrot.lane.b32.xlu1 %v1356_v32, %s2090_s20 }
 0x19f   :  { %v1185_v10 = vrot.slane %v1183_v34, 4  ;;  %v2962_v62 = vrot.slane %v1121_v35, 5  ;;  %v1184_v47 = vsel %vm2261_vm5, %v1182_v5, %v1183_v34  ;;  %v734_v34 = vadd.f32 %v2912_v51, %v2917_v41 }
 0x1a0   :  { %v2967_v8 = vmax.f32 %v1119_v20, %v1184_v47  ;;  %v737_v41 = vadd.f32 %v2929_v23, %v2937_v28 }
 0x1a1   :  { %v1187_v37 = vsel %vm2261_vm5, %v1185_v10, %v2962_v62  ;;  %v617_v60 = vpop.f32.mrf.mxu0 }
 0x1a2   :  { %v1370_v2 = vperm.slane %v2967_v8, 2  ;;  %v2973_v49 = vmax.f32 %v1120_v16, %v1187_v37  ;;  %v746_v46 = vadd.f32 %v745_v63, %v617_v60 }
 0x1a4   :  { %1372 = vrot.lane.b32.xlu0 %v1370_v2, %s2090_s20  ;;  %v1384_v26 = vperm.slane %v2973_v49, 2  ;;  %v781_v57 = vrot.slane %v746_v46, 4  ;;  %v1066_v2 = vadd.f32 %v2958_v53, %v734_v34 }
 0x1a6   :  { %v2977_v6 = vpop.f32.mrf.mxu2  ;;  %1386 = vrot.lane.b32.xlu2 %v1384_v26, %s2090_s20  ;;  %v751_v26 = vpop.f32.mrf.mxu1 }
 0x1a7   :  { %v1068_v28 = vadd.f32 %v2977_v6, %v737_v41 }
 0x1a9   :  { %v620_v11 = vpop.f32.mrf.mxu0 }
 0x1aa   :  { %v749_v32 = vadd.f32 %v748_v4, %v620_v11  ;;  %v777_v4 = vrot.slane %v734_v34, 4 }
 0x1ae   :  { %v2982_v19 = vpop.f32.mrf.mxu2 }
 0x1af   :  { %v1038_v15 = vrot.slane %v2982_v19, 4 }
 0x1b1   :  { %v1071_v61 = vadd.f32 %v1038_v15, %v779_v14  ;;  %v623_v15 = vpop.f32.mrf.mxu0  ;;  %v782_v14 = vrot.slane %v749_v32, 4 }
 0x1b3   :  { %v1101_v22 = vadd.f32 %v2905_v43, %v1071_v61 }
 0x1b5   :  { %v1127_v20 = vmax.f32 %v1101_v22, 0.0 }
 0x1b6   :  { %v1001_v45 = vpop.f32.mrf.mxu2 }
 0x1b7   :  { %v1039_v38 = vrot.slane %v1001_v45, 4  ;;  %v1072_v25 = vadd.f32 %v1001_v45, %v743_v39  ;;  %v2078_v44 = vrot.slane %v1127_v20, 9 }
 0x1b9   :  { %v1073_v55 = vadd.f32 %v1039_v38, %v780_v36  ;;  %v1102_v52 = vadd.f32 %v2908_v12, %v1072_v25  ;;  %v1036_v36 = vrot.slane %v2958_v53, 4  ;;  %v3010_v38 = vadd.f32 %v2905_v43, %v1066_v2 }
 0x1ba   :  { %v1037_v25 = vrot.slane %v2977_v6, 4 }
 0x1bb   :  { %v1103_v18 = vadd.f32 %v2905_v43, %v1073_v55  ;;  %v1128_v54 = vmax.f32 %v1102_v52, 0.0  ;;  %v1067_v6 = vadd.f32 %v1036_v36, %v777_v4 }
 0x1bd   :  { %v1129_v29 = vmax.f32 %v1103_v18, 0.0  ;;  %v1206_v3 = vrot.slane %v1128_v54, 5  ;;  %v752_v18 = vadd.f32 %v751_v26, %v623_v15 }
 0x1be   :  { %v1004_v0 = vpop.f32.mrf.mxu2 }
 0x1bf   :  { %v1208_v48 = vrot.slane %v1206_v3, 4  ;;  %v1209_v42 = vrot.slane %v1129_v29, 5  ;;  %v1040_v56 = vrot.slane %v1004_v0, 4  ;;  %v1074_v27 = vadd.f32 %v1004_v0, %v746_v46 }
 0x1c0   :  { %v1207_v17 = vsel %vm2261_vm5, %v2078_v44, %v1206_v3  ;;  %v1122_v44 = vmax.f32 %v3010_v38, 0.0 }
 0x1c1   :  { %v1075_v16 = vadd.f32 %v1040_v56, %v781_v57  ;;  %v1104_v21 = vadd.f32 %v2908_v12, %v1074_v27  ;;  %v2992_v50 = vmax.f32 %v1127_v20, %v1207_v17  ;;  %v1210_v33 = vsel %vm2261_vm5, %v1208_v48, %v1209_v42  ;;  %v754_v17 = vpop.f32.mrf.mxu1 }
 0x1c2   :  { %v3000_v37 = vmax.f32 %v1128_v54, %v1210_v33  ;;  %v1211_v63 = vrot.slane %v1209_v42, 4  ;;  %v778_v20 = vrot.slane %v737_v41, 4  ;;  %v783_v27 = vrot.slane %v752_v18, 4 }
 0x1c3   :  { %v1105_v5 = vadd.f32 %v2905_v43, %v1075_v16  ;;  %v1130_v10 = vmax.f32 %v1104_v21, 0.0  ;;  %v1297_v47 = vperm.slane %v2992_v50, 2  ;;  %v1189_v2 = vrot.slane %v1122_v44, 5 }
 0x1c4   :  { %v1315_v51 = vperm.slane %v3000_v37, 2  ;;  %v1069_v0 = vadd.f32 %v1037_v25, %v778_v20 }
 0x1c5   :  { %v1131_v59 = vmax.f32 %v1105_v5, 0.0  ;;  %v1212_v7 = vrot.slane %v1130_v10, 5  ;;  %1300 = vrot.lane.b32.xlu0 %v1297_v47, %s2090_s20  ;;  %v3036_v47 = vadd.f32 %v2908_v12, %v1067_v6  ;;  %v1191_v20 = vrot.slane %v1189_v2, 4 }
 0x1c6   :  { %v1007_v60 = vpop.f32.mrf.mxu2  ;;  %1318 = vrot.lane.b32.xlu2 %v1315_v51, %s2090_s20  ;;  %v3041_v26 = vadd.f32 %v2908_v12, %v1069_v0 }
 0x1c7   :  { %v1214_v61 = vrot.slane %v1212_v7, 4  ;;  %v1215_v39 = vrot.slane %v1131_v59, 5  ;;  %v1041_v22 = vrot.slane %v1007_v60, 4  ;;  %v1076_v45 = vadd.f32 %v1007_v60, %v749_v32 }
 0x1c8   :  { %v1213_v23 = vsel %vm2261_vm5, %v1211_v63, %v1212_v7  ;;  %v1188_v63 = vrot.slane %v2962_v62, 4  ;;  %v1123_v25 = vmax.f32 %v3036_v47, 0.0 }
 0x1c9   :  { %v1077_v55 = vadd.f32 %v1041_v22, %v782_v14  ;;  %v1106_v52 = vadd.f32 %v2908_v12, %v1076_v45  ;;  %v3017_v46 = vmax.f32 %v1129_v29, %v1213_v23  ;;  %v1216_v53 = vsel %vm2261_vm5, %v1214_v61, %v1215_v39 }
 0x1ca   :  { %v3025_v57 = vmax.f32 %v1130_v10, %v1216_v53  ;;  %v3029_v29 = vadd.f32 %v2905_v43, %v1068_v28  ;;  %v1217_v16 = vrot.slane %v1215_v39, 4  ;;  %v626_v10 = vpop.f32.mrf.mxu0  ;;  %v1125_v23 = vmax.f32 %v3041_v26, 0.0 }
 0x1cb   :  { %v3022_v54 = vadd.f32 %v2905_v43, %v1077_v55  ;;  %v1132_v11 = vmax.f32 %v1106_v52, 0.0  ;;  %v1329_v3 = vperm.slane %v3017_v46, 2  ;;  %v755_v60 = vadd.f32 %v754_v17, %v626_v10 }
 0x1cc   :  { %v1343_v56 = vperm.slane %v3025_v57, 2  ;;  %v1124_v51 = vmax.f32 %v3029_v29, 0.0  ;;  %v1190_v62 = vsel %vm2261_vm5, %v1188_v63, %v1189_v2  ;;  %v1192_v6 = vrot.slane %v1123_v25, 5 }
 0x1cd   :  { %v1133_v48 = vmax.f32 %v3022_v54, 0.0  ;;  %v1218_v42 = vrot.slane %v1132_v11, 5  ;;  %1332 = vrot.lane.b32.xlu1 %v1329_v3, %s2090_s20 }
 0x1ce   :  { %v1010_v21 = vpop.f32.mrf.mxu2  ;;  %1346 = vrot.lane.b32.xlu0 %v1343_v56, %s2090_s20  ;;  %v1195_v28 = vrot.slane %v1124_v51, 5  ;;  %v1194_v2 = vrot.slane %v1192_v6, 4 }
 0x1cf   :  { %v1220_v34 = vrot.slane %v1218_v42, 4  ;;  %v1221_v32 = vrot.slane %v1133_v48, 5  ;;  %v1042_v33 = vrot.slane %v1010_v21, 4  ;;  %v1078_v5 = vadd.f32 %v1010_v21, %v752_v18 }
 0x1d0   :  { %v1219_v7 = vsel %vm2261_vm5, %v1217_v16, %v1218_v42  ;;  %v784_v18 = vrot.slane %v755_v60, 4  ;;  %v757_v42 = vpop.f32.mrf.mxu1  ;;  %v1197_v17 = vrot.slane %v1195_v28, 4  ;;  %v1198_v16 = vrot.slane %v1125_v23, 5 }
 0x1d1   :  { %v1079_v41 = vadd.f32 %v1042_v33, %v783_v27  ;;  %v1108_v15 = vadd.f32 %v2908_v12, %v1078_v5  ;;  %v3047_v14 = vmax.f32 %v1131_v59, %v1219_v7  ;;  %v1222_v61 = vsel %vm2261_vm5, %v1220_v34, %v1221_v32 }
 0x1d2   :  { %v3056_v36 = vmax.f32 %v1132_v11, %v1222_v61  ;;  %v1070_v59 = vadd.f32 %v2982_v19, %v2980_v9  ;;  %v1223_v53 = vrot.slane %v1221_v32, 4  ;;  %v3079_v27 = vmax.f32 %v1121_v35, %v1190_v62  ;;  %v629_v32 = vpop.f32.mrf.mxu0 }
 0x1d3   :  { %v3053_v39 = vadd.f32 %v2905_v43, %v1079_v41  ;;  %v1134_v22 = vmax.f32 %v1108_v15, 0.0  ;;  %v1357_v45 = vperm.slane %v3047_v14, 2  ;;  %v758_v10 = vadd.f32 %v757_v42, %v629_v32 }
 0x1d4   :  { %v1371_v4 = vperm.slane %v3056_v36, 2  ;;  %v3073_v0 = vadd.f32 %v2905_v43, %v1070_v59  ;;  %v1398_v15 = vperm.slane %v3079_v27, 2 }
 0x1d5   :  { %v1135_v55 = vmax.f32 %v3053_v39, 0.0  ;;  %v1224_v52 = vrot.slane %v1134_v22, 5  ;;  %1360 = vrot.lane.b32.xlu2 %v1357_v45, %s2090_s20  ;;  %v1196_v45 = vsel %vm2261_vm5, %v1194_v2, %v1195_v28  ;;  %v785_v59 = vrot.slane %v758_v10, 4 }
 0x1d6   :  { %v1013_v54 = vpop.f32.mrf.mxu2  ;;  %1374 = vrot.lane.b32.xlu1 %v1371_v4, %s2090_s20  ;;  %v1126_v7 = vmax.f32 %v3073_v0, 0.0 }
 0x1d7   :  { %v1226_v11 = vrot.slane %v1224_v52, 4  ;;  %v1227_v9 = vrot.slane %v1135_v55, 5  ;;  %v1043_v19 = vrot.slane %v1013_v54, 4  ;;  %v1080_v3 = vadd.f32 %v1013_v54, %v755_v60 }
 0x1d8   :  { %v1225_v56 = vsel %vm2261_vm5, %v1223_v53, %v1224_v52  ;;  %v1199_v60 = vsel %vm2261_vm5, %v1197_v17, %v1198_v16 }
 0x1d9   :  { %v1081_v21 = vadd.f32 %v1043_v19, %v784_v18  ;;  %v3083_v34 = vmax.f32 %v1133_v48, %v1225_v56  ;;  %v3086_v33 = vadd.f32 %v2908_v12, %v1080_v3  ;;  %v1228_v5 = vsel %vm2261_vm5, %v1226_v11, %v1227_v9 }
 0x1da   :  { %v3092_v35 = vmax.f32 %v1134_v22, %v1228_v5  ;;  %v1193_v48 = vsel %vm2261_vm5, %v1191_v20, %v1192_v6  ;;  %v1201_v20 = vrot.slane %v1126_v7, 5  ;;  %v3113_v18 = vmax.f32 %v1124_v51, %v1199_v60 }
 0x1db   :  { %v1111_v47 = vadd.f32 %v2905_v43, %v1081_v21  ;;  %v1385_v58 = vperm.slane %v3083_v34, 2  ;;  %v1136_v61 = vmax.f32 %v3086_v33, 0.0  ;;  %v3109_v4 = vmax.f32 %v1122_v44, %v1193_v48 }
 0x1dc   :  { %v1399_v63 = vperm.slane %v3092_v35, 2  ;;  %v3116_v11 = vmax.f32 %v1123_v25, %v1196_v45  ;;  %v1200_v19 = vrot.slane %v1198_v16, 4  ;;  %v1229_v44 = vrot.slane %v1227_v9, 4  ;;  %v1522_v16 = vld [vmem:[%s3924_s2 + $0x130] sm:$0xff] }
 0x1dd   :  { %v1137_v41 = vmax.f32 %v1111_v47, 0.0  ;;  %1388 = vrot.lane.b32.xlu0 %v1385_v58, %s2090_s20  ;;  %v1230_v3 = vrot.slane %v1136_v61, 5  ;;  %v1412_v38 = vperm.slane %v3109_v4, 2  ;;  %v1440_v56 = vperm.slane %v3113_v18, 2 }
 0x1de   :  { %v1016_v22 = vpop.f32.mrf.mxu2  ;;  %1400 = vrot.lane.b32.xlu1 %v1398_v15, %s2090_s20  ;;  %1402 = vrot.lane.b32.xlu2 %v1399_v63, %s2090_s20  ;;  %v1202_v42 = vsel %vm2261_vm5, %v1200_v19, %v1201_v20  ;;  %v1545_v19 = vld [vmem:[%s3924_s2 + $0x1e8] sm:$0xff] }
 0x1df   :  { %v1044_v62 = vrot.slane %v1016_v22, 4  ;;  %v1082_v52 = vadd.f32 %v1016_v22, %v758_v10  ;;  %v1233_v53 = vrot.slane %v1137_v41, 5  ;;  %v1231_v17 = vsel %vm2261_vm5, %v1229_v44, %v1230_v3  ;;  %v1544_v44 = vld [vmem:[%s3924_s2 + $0x1e0] sm:$0xff] }
 0x1e0   :  { %v3136_v9 = vmax.f32 %v1125_v23, %v1202_v42  ;;  %v1232_v32 = vrot.slane %v1230_v3, 4  ;;  %v3144_v10 = vmax.f32 %v1135_v55, %v1231_v17  ;;  %v1203_v55 = vrot.slane %v1201_v20, 4  ;;  %v1563_v3 = vld [vmem:[%s3924_s2 + $0x278] sm:$0xff] }
 0x1e1   :  { %v1083_v54 = vadd.f32 %v1044_v62, %v785_v59  ;;  %v1112_v28 = vadd.f32 %v2908_v12, %v1082_v52  ;;  %v1235_v29 = vrot.slane %v1233_v53, 4  ;;  %v1426_v12 = vperm.slane %v3116_v11, 2  ;;  %1813 = vmatpush.msrb.mxu1 %v1563_v3 }
 0x1e2   :  { %v1454_v26 = vperm.slane %v3136_v9, 2  ;;  %v1234_v23 = vsel %vm2261_vm5, %v1232_v32, %v1233_v53  ;;  %v3162_v15 = vmax.f32 %v1126_v7, %v1203_v55  ;;  %v1499_v53 = vld [vmem:[%s3924_s2 + $0x78] sm:$0xff] }
 0x1e3   :  { %v1113_v6 = vadd.f32 %v2905_v43, %v1083_v54  ;;  %v1138_v0 = vmax.f32 %v1112_v28, 0.0  ;;  %v3949_v43 = vlaneseq  ;;  %v1498_v54 = vld [vmem:[%s3924_s2 + $0x70] sm:$0xff]  ;;  %1733 = vmatpush.msra.mxu3 %v1499_v53  ;;  %v1497_v28 = vld [vmem:[%s3924_s2 + $0x68] sm:$0xff] }
 0x1e4   :  { %v1468_v45 = vperm.slane %v3162_v15, 2  ;;  %v1486_v53 = vld [vmem:[%s3924_s2 + $0x10] sm:$0xff] }
 0x1e5   :  { %v1236_v51 = vrot.slane %v1138_v0, 5  ;;  %1414 = vrot.lane.b32.xlu0 %v1412_v38, %s2090_s20  ;;  %v1139_v25 = vmax.f32 %v1113_v6, 0.0  ;;  %vm3128_vm11 = vcmp.lt.s32.totalorder %v3949_v43, 128  ;;  %1734 = vmatpush.msra.mxu3 %v1498_v54  ;;  %v1562_v6 = vld [vmem:[%s3924_s2 + $0x270] sm:$0xff]  ;;  %v1496_v38 = vld [vmem:[%s3924_s2 + $0x60] sm:$0xff]  ;;  %v1493_v43 = vld [vmem:[%s3924_s2 + $0x48] sm:$0xff] }
 0x1e6   :  { %1442 = vrot.lane.b32.xlu1 %v1440_v56, %s2090_s20  ;;  %1428 = vrot.lane.b32.xlu2 %v1426_v12, %s2090_s20  ;;  %v1543_v56 = vld [vmem:[%s3924_s2 + $0x1d8] sm:$0xff] }
 0x1e7   :  { %v1237_v21 = vsel %vm2261_vm5, %v1235_v29, %v1236_v51  ;;  %v1238_v58 = vrot.slane %v1236_v51, 4  ;;  %v1239_v2 = vrot.slane %v1139_v25, 5  ;;  %1735 = vmatpush.msra.mxu3 %v1497_v28  ;;  %v1495_v51 = vld [vmem:[%s3924_s2 + $0x58] sm:$0xff]  ;;  %1814 = vmatpush.msrb.mxu1 %v1562_v6  ;;  %v1485_v28 = vld [vmem:[%s3924_s2 + $0x8] sm:$0xff]  ;;  %v1552_v6 = vld [vmem:[%s3924_s2 + $0x220] sm:$0xff] }
 0x1e8   :  { %v1299_v33 = vpop.permute.xlu2 %1298  ;;  %v3146_v47 = vmax.f32 %v1137_v41, %v1237_v21  ;;  %v3160_v41 = vmax.f32 %v1136_v61, %v1234_v23  ;;  %v1541_v21 = vld [vmem:[%s3924_s2 + $0x1c8] sm:$0xff]  ;;  %v1558_v23 = vld [vmem:[%s3924_s2 + $0x250] sm:$0xff] }
 0x1e9   :  { %v1304_v5 = vsel %vm549_vm10, %v2919_v30, %v1299_v33  ;;  %v1413_v30 = vperm.slane %v3144_v10, 2  ;;  %v1240_v48 = vsel %vm2261_vm5, %v1238_v58, %v1239_v2  ;;  %v1241_v22 = vrot.slane %v1239_v2, 4  ;;  %1736 = vmatpush.msra.mxu3 %v1496_v38  ;;  %v1560_v33 = vld [vmem:[%s3924_s2 + $0x260] sm:$0xff]  ;;  %v1491_v2 = vld [vmem:[%s3924_s2 + $0x38] sm:$0xff] }
 0x1ea   :  { %1310 = vst.msk [vmem:[#allocation2] sm:$0x1] %vm3128_vm11, %v1304_v5  ;;  %v1441_v39 = vperm.slane %v3146_v47, 2  ;;  %v3164_v63 = vmax.f32 %v1138_v0, %v1240_v48  ;;  %v1427_v60 = vperm.slane %v3160_v41, 2  ;;  %v1492_v5 = vld [vmem:[%s3924_s2 + $0x40] sm:$0xff] }
 0x1eb   :  { %v3172_v61 = vmax.f32 %v1139_v25, %v1241_v22  ;;  %v1542_v25 = vld [vmem:[%s3924_s2 + $0x1d0] sm:$0xff]  ;;  %1737 = vmatpush.msra.mxu3 %v1495_v51  ;;  %v1540_v58 = vld [vmem:[%s3924_s2 + $0x1c0] sm:$0xff]  ;;  %v1489_v22 = vld [vmem:[%s3924_s2 + $0x28] sm:$0xff] }
 0x1ec   :  { %v1455_v40 = vperm.slane %v3164_v63, 2  ;;  %v1532_v38 = vld [vmem:[%s3924_s2 + $0x180] sm:$0xff]  ;;  %v1578_v51 = vld [vmem:[%s3924_s2 + $0x2f0] sm:$0xff] }
 0x1ed   :  { %1456 = vrot.lane.b32.xlu0 %v1454_v26, %s2090_s20  ;;  %v1469_v62 = vperm.slane %v3172_v61, 2  ;;  %v1539_v26 = vld [vmem:[%s3924_s2 + $0x1b8] sm:$0xff] }
 0x1ee   :  { %1416 = vrot.lane.b32.xlu1 %v1413_v30, %s2090_s20  ;;  %1444 = vrot.lane.b32.xlu2 %v1441_v39, %s2090_s20  ;;  %v1490_v30 = vld [vmem:[%s3924_s2 + $0x30] sm:$0xff] }
 0x1ef   :  { %v1538_v39 = vld [vmem:[%s3924_s2 + $0x1b0] sm:$0xff] }
 0x1f5   :  { %1430 = vrot.lane.b32.xlu0 %v1427_v60, %s2090_s20  ;;  %v1557_v60 = vld [vmem:[%s3924_s2 + $0x248] sm:$0xff] }
 0x1f6   :  { %1470 = vrot.lane.b32.xlu2 %v1468_v45, %s2090_s20  ;;  %1458 = vrot.lane.b32.xlu1 %v1455_v40, %s2090_s20  ;;  %v1537_v45 = vld [vmem:[%s3924_s2 + $0x1a8] sm:$0xff]  ;;  %v1488_v40 = vld [vmem:[%s3924_s2 + $0x20] sm:$0xff] }
 0x1f7   :  { %v1345_v59 = vpop.permute.xlu2 %1344 }
 0x1f8   :  { %v1350_v7 = vsel %vm549_vm10, %v2945_v13, %v1345_v59  ;;  %v1547_v13 = vld [vmem:[%s3924_s2 + $0x1f8] sm:$0xff]  ;;  %v1536_v59 = vld [vmem:[%s3924_s2 + $0x1a0] sm:$0xff] }
 0x1f9   :  { %1352 = vst.msk [vmem:[#allocation2 + $0x3] sm:$0x1] %vm3128_vm11, %v1350_v7  ;;  %1793 = vmatpush.msrb.mxu0 %v1547_v13  ;;  %v1555_v7 = vld [vmem:[%s3924_s2 + $0x238] sm:$0xff]  ;;  %v1534_v13 = vld [vmem:[%s3924_s2 + $0x190] sm:$0xff] }
 0x1fd   :  { %1472 = vrot.lane.b32.xlu0 %v1469_v62, %s2090_s20  ;;  %v1487_v62 = vld [vmem:[%s3924_s2 + $0x18] sm:$0xff] }
 0x200   :  { %v1387_v52 = vpop.permute.xlu2 %1386 }
 0x201   :  { %v1392_v20 = vsel %vm549_vm10, %v2973_v49, %v1387_v52  ;;  %v1546_v49 = vld [vmem:[%s3924_s2 + $0x1f0] sm:$0xff]  ;;  %v1535_v52 = vld [vmem:[%s3924_s2 + $0x198] sm:$0xff] }
 0x202   :  { %1394 = vst.msk [vmem:[#allocation2 + $0x6] sm:$0x1] %vm3128_vm11, %v1392_v20  ;;  %1794 = vmatpush.msrb.mxu0 %v1546_v49  ;;  %v1554_v20 = vld [vmem:[%s3924_s2 + $0x230] sm:$0xff]  ;;  %v1553_v49 = vld [vmem:[%s3924_s2 + $0x228] sm:$0xff] }
 0x204   :  { %1795 = vmatpush.msrb.mxu0 %v1545_v19  ;;  %v1533_v19 = vld [vmem:[%s3924_s2 + $0x188] sm:$0xff] }
 0x206   :  { %1796 = vmatpush.msrb.mxu0 %v1544_v44  ;;  %v1515_v44 = vld [vmem:[%s3924_s2 + $0xf8] sm:$0xff] }
 0x207   :  { %v1317_v0 = vpop.permute.xlu1 %1316 }
 0x208   :  { %v1322_v42 = vsel %vm549_vm10, %v2927_v31, %v1317_v0  ;;  %v1331_v29 = vpop.permute.xlu0 %1330  ;;  %v1494_v31 = vld [vmem:[%s3924_s2 + $0x50] sm:$0xff]  ;;  %1797 = vmatpush.msrb.mxu0 %v1543_v56  ;;  %v1484_v0 = vld [vmem:[%s3924_s2] sm:$0xff] }
 0x209   :  { %1324 = vst.msk [vmem:[#allocation2 + $0x1] sm:$0x1] %vm3128_vm11, %v1322_v42  ;;  %v1336_v12 = vsel %vm549_vm10, %v2935_v1, %v1331_v29  ;;  %1738 = vmatpush.msra.mxu3 %v1494_v31  ;;  %v1561_v1 = vld [vmem:[%s3924_s2 + $0x268] sm:$0xff]  ;;  %v1551_v42 = vld [vmem:[%s3924_s2 + $0x218] sm:$0xff]  ;;  %v1514_v56 = vld [vmem:[%s3924_s2 + $0xf0] sm:$0xff] }
 0x20a   :  { %1338 = vst.msk [vmem:[#allocation2 + $0x2] sm:$0x1] %vm3128_vm11, %v1336_v12  ;;  %1798 = vmatpush.msrb.mxu0 %v1542_v25  ;;  %1815 = vmatpush.msrb.mxu1 %v1561_v1  ;;  %v1611_v29 = vld [vmem:[%s3924_s2 + $0x3f8] sm:$0xff]  ;;  %v1550_v12 = vld [vmem:[%s3924_s2 + $0x210] sm:$0xff]  ;;  %v1577_v25 = vld [vmem:[%s3924_s2 + $0x2e8] sm:$0xff] }
 0x20b   :  { %1739 = vmatpush.msra.mxu3 %v1493_v43  ;;  %v1610_v31 = vld [vmem:[%s3924_s2 + $0x3f0] sm:$0xff]  ;;  %v1549_v1 = vld [vmem:[%s3924_s2 + $0x208] sm:$0xff] }
 0x20c   :  { %1799 = vmatpush.msrb.mxu0 %v1541_v21  ;;  %1816 = vmatpush.msrb.mxu1 %v1560_v33  ;;  %v1609_v43 = vld [vmem:[%s3924_s2 + $0x3e8] sm:$0xff]  ;;  %v1576_v21 = vld [vmem:[%s3924_s2 + $0x2e0] sm:$0xff] }
 0x20d   :  { %1740 = vmatpush.msra.mxu3 %v1492_v5  ;;  %v1548_v33 = vld [vmem:[%s3924_s2 + $0x200] sm:$0xff] }
 0x20e   :  { %1800 = vmatpush.msrb.mxu0 %v1540_v58  ;;  %v1608_v5 = vld [vmem:[%s3924_s2 + $0x3e0] sm:$0xff]  ;;  %v1575_v58 = vld [vmem:[%s3924_s2 + $0x2d8] sm:$0xff] }
 0x20f   :  { %1741 = vmatpush.msra.mxu3 %v1491_v2  ;;  %v1511_v2 = vld [vmem:[%s3924_s2 + $0xd8] sm:$0xff] }
 0x210   :  { %v1359_v17 = vpop.permute.xlu1 %1358  ;;  %1801 = vmatpush.msrb.mxu0 %v1539_v26  ;;  %v1607_v26 = vld [vmem:[%s3924_s2 + $0x3d8] sm:$0xff] }
 0x211   :  { %v1364_v32 = vsel %vm549_vm10, %v2953_v24, %v1359_v17  ;;  %v1559_v24 = vld [vmem:[%s3924_s2 + $0x258] sm:$0xff]  ;;  %1742 = vmatpush.msra.mxu3 %v1490_v30  ;;  %v1513_v17 = vld [vmem:[%s3924_s2 + $0xe8] sm:$0xff]  ;;  %v1626_v30 = vld [vmem:[%s3924_s2 + $0x470] sm:$0xff] }
 0x212   :  { %1366 = vst.msk [vmem:[#allocation2 + $0x4] sm:$0x1] %vm3128_vm11, %v1364_v32  ;;  %1817 = vmatpush.msrb.mxu1 %v1559_v24  ;;  %1802 = vmatpush.msrb.mxu0 %v1538_v39  ;;  %v1512_v32 = vld [vmem:[%s3924_s2 + $0xe0] sm:$0xff]  ;;  %v1627_v24 = vld [vmem:[%s3924_s2 + $0x478] sm:$0xff]  ;;  %v1510_v39 = vld [vmem:[%s3924_s2 + $0xd0] sm:$0xff] }
 0x213   :  { %1743 = vmatpush.msra.mxu3 %v1489_v22  ;;  %v1625_v22 = vld [vmem:[%s3924_s2 + $0x468] sm:$0xff] }
 0x214   :  { %1818 = vmatpush.msrb.mxu1 %v1558_v23  ;;  %1803 = vmatpush.msrb.mxu0 %v1537_v45  ;;  %v1574_v23 = vld [vmem:[%s3924_s2 + $0x2d0] sm:$0xff] }
 0x215   :  { %1744 = vmatpush.msra.mxu3 %v1488_v40  ;;  %v1605_v40 = vld [vmem:[%s3924_s2 + $0x3c8] sm:$0xff] }
 0x216   :  { %v1373_v55 = vpop.permute.xlu0 %1372  ;;  %1819 = vmatpush.msrb.mxu1 %v1557_v60  ;;  %1804 = vmatpush.msrb.mxu0 %v1536_v59  ;;  %v1573_v60 = vld [vmem:[%s3924_s2 + $0x2c8] sm:$0xff]  ;;  %v1624_v59 = vld [vmem:[%s3924_s2 + $0x460] sm:$0xff] }
 0x217   :  { %v1378_v48 = vsel %vm549_vm10, %v2967_v8, %v1373_v55  ;;  %v1556_v8 = vld [vmem:[%s3924_s2 + $0x240] sm:$0xff]  ;;  %1745 = vmatpush.msra.mxu3 %v1487_v62  ;;  %v1606_v55 = vld [vmem:[%s3924_s2 + $0x3d0] sm:$0xff] }
 0x218   :  { %1380 = vst.msk [vmem:[#allocation2 + $0x5] sm:$0x1] %vm3128_vm11, %v1378_v48  ;;  %1820 = vmatpush.msrb.mxu1 %v1556_v8  ;;  %1805 = vmatpush.msrb.mxu0 %v1535_v52  ;;  %v1509_v8 = vld [vmem:[%s3924_s2 + $0xc8] sm:$0xff]  ;;  %v1604_v62 = vld [vmem:[%s3924_s2 + $0x3c0] sm:$0xff]  ;;  %v1571_v52 = vld [vmem:[%s3924_s2 + $0x2b8] sm:$0xff] }
 0x219   :  { %1746 = vmatpush.msra.mxu3 %v1486_v53  ;;  %v1507_v53 = vld [vmem:[%s3924_s2 + $0xb8] sm:$0xff] }
 0x21a   :  { %1821 = vmatpush.msrb.mxu1 %v1555_v7  ;;  %1806 = vmatpush.msrb.mxu0 %v1534_v13  ;;  %v1508_v7 = vld [vmem:[%s3924_s2 + $0xc0] sm:$0xff]  ;;  %v1603_v13 = vld [vmem:[%s3924_s2 + $0x3b8] sm:$0xff] }
 0x21b   :  { %1747 = vmatpush.msra.mxu3 %v1485_v28 }
 0x21c   :  { %1822 = vmatpush.msrb.mxu1 %v1554_v20  ;;  %1807 = vmatpush.msrb.mxu0 %v1533_v19  ;;  %v1623_v20 = vld [vmem:[%s3924_s2 + $0x458] sm:$0xff]  ;;  %v1506_v19 = vld [vmem:[%s3924_s2 + $0xb0] sm:$0xff] }
 0x21d   :  { %1748 = vmatpush.msra.mxu3 %v1484_v0  ;;  %v1569_v0 = vld [vmem:[%s3924_s2 + $0x2a8] sm:$0xff] }
 0x21e   :  { %1823 = vmatpush.msrb.mxu1 %v1553_v49  ;;  %1808 = vmatpush.msrb.mxu0 %v1532_v38  ;;  %v1622_v49 = vld [vmem:[%s3924_s2 + $0x450] sm:$0xff]  ;;  %v1621_v38 = vld [vmem:[%s3924_s2 + $0x448] sm:$0xff] }
 0x21f   :  { %1753 = vmatpush.msrb.mxu3 %v1515_v44  ;;  %v1601_v44 = vld [vmem:[%s3924_s2 + $0x3a8] sm:$0xff] }
 0x220   :  { %v1319_v54 = vpop.permute.xlu2 %1318  ;;  %1824 = vmatpush.msrb.mxu1 %v1552_v6  ;;  %1873 = vmatpush.msra.mxu0 %v1611_v29  ;;  %v1568_v29 = vld [vmem:[%s3924_s2 + $0x2a0] sm:$0xff] }
 0x221   :  { %v1323_v3 = vsel %vm549_vm10, %v3000_v37, %v1319_v54  ;;  %v1579_v37 = vld [vmem:[%s3924_s2 + $0x2f8] sm:$0xff]  ;;  %1754 = vmatpush.msrb.mxu3 %v1514_v56  ;;  %v1570_v54 = vld [vmem:[%s3924_s2 + $0x2b0] sm:$0xff]  ;;  %v1504_v56 = vld [vmem:[%s3924_s2 + $0xa0] sm:$0xff] }
 0x222   :  { %1325 = vst.msk [vmem:[#allocation2 + $0xe] sm:$0x1] %vm3128_vm11, %v1323_v3  ;;  %1833 = vmatpush.msrb.mxu2 %v1579_v37  ;;  %1825 = vmatpush.msrb.mxu1 %v1551_v42  ;;  %v1602_v3 = vld [vmem:[%s3924_s2 + $0x3b0] sm:$0xff] }
 0x223   :  { %1874 = vmatpush.msra.mxu0 %v1610_v31  ;;  %1755 = vmatpush.msrb.mxu3 %v1513_v17  ;;  %v1619_v31 = vld [vmem:[%s3924_s2 + $0x438] sm:$0xff] }
 0x224   :  { %1834 = vmatpush.msrb.mxu2 %v1578_v51  ;;  %1826 = vmatpush.msrb.mxu1 %v1550_v12  ;;  %v1620_v51 = vld [vmem:[%s3924_s2 + $0x440] sm:$0xff]  ;;  %v1567_v12 = vld [vmem:[%s3924_s2 + $0x298] sm:$0xff] }
 0x225   :  { %1875 = vmatpush.msra.mxu0 %v1609_v43  ;;  %1756 = vmatpush.msrb.mxu3 %v1512_v32  ;;  %v1599_v17 = vld [vmem:[%s3924_s2 + $0x398] sm:$0xff]  ;;  %v1618_v43 = vld [vmem:[%s3924_s2 + $0x430] sm:$0xff] }
 0x226   :  { %1835 = vmatpush.msrb.mxu2 %v1577_v25  ;;  %1827 = vmatpush.msrb.mxu1 %v1549_v1  ;;  %v1503_v25 = vld [vmem:[%s3924_s2 + $0x98] sm:$0xff]  ;;  %v1566_v1 = vld [vmem:[%s3924_s2 + $0x290] sm:$0xff] }
 0x227   :  { %1876 = vmatpush.msra.mxu0 %v1608_v5  ;;  %1757 = vmatpush.msrb.mxu3 %v1511_v2  ;;  %v1598_v32 = vld [vmem:[%s3924_s2 + $0x390] sm:$0xff]  ;;  %v1565_v5 = vld [vmem:[%s3924_s2 + $0x288] sm:$0xff] }
 0x228   :  { %1836 = vmatpush.msrb.mxu2 %v1576_v21  ;;  %1828 = vmatpush.msrb.mxu1 %v1548_v33  ;;  %v1502_v21 = vld [vmem:[%s3924_s2 + $0x90] sm:$0xff] }
 0x229   :  { %1877 = vmatpush.msra.mxu0 %v1607_v26  ;;  %1758 = vmatpush.msrb.mxu3 %v1510_v39 }
 0x22a   :  { %1837 = vmatpush.msrb.mxu2 %v1575_v58  ;;  %1893 = vmatpush.msra.mxu1 %v1627_v24  ;;  %v1617_v58 = vld [vmem:[%s3924_s2 + $0x428] sm:$0xff] }
 0x22b   :  { %1878 = vmatpush.msra.mxu0 %v1606_v55  ;;  %1759 = vmatpush.msrb.mxu3 %v1509_v8  ;;  %v1564_v55 = vld [vmem:[%s3924_s2 + $0x280] sm:$0xff]  ;;  %v1614_v8 = vld [vmem:[%s3924_s2 + $0x410] sm:$0xff] }
 0x22c   :  { %1838 = vmatpush.msrb.mxu2 %v1574_v23  ;;  %1894 = vmatpush.msra.mxu1 %v1626_v30  ;;  %v1501_v23 = vld [vmem:[%s3924_s2 + $0x88] sm:$0xff] }
 0x22d   :  { %1879 = vmatpush.msra.mxu0 %v1605_v40  ;;  %1760 = vmatpush.msrb.mxu3 %v1508_v7  ;;  %v1597_v30 = vld [vmem:[%s3924_s2 + $0x388] sm:$0xff] }
 0x22e   :  { %1839 = vmatpush.msrb.mxu2 %v1573_v60  ;;  %1895 = vmatpush.msra.mxu1 %v1625_v22  ;;  %v1643_v60 = vld [vmem:[%s3924_s2 + $0x4f8] sm:$0xff]  ;;  %v1641_v40 = vld [vmem:[%s3924_s2 + $0x4e8] sm:$0xff] }
 0x22f   :  { %v1361_v48 = vpop.permute.xlu2 %1360  ;;  %1880 = vmatpush.msra.mxu0 %v1604_v62  ;;  %1761 = vmatpush.msrb.mxu3 %v1507_v53  ;;  %v1615_v22 = vld [vmem:[%s3924_s2 + $0x418] sm:$0xff]  ;;  %v1640_v62 = vld [vmem:[%s3924_s2 + $0x4e0] sm:$0xff] }
 0x230   :  { %v1365_v45 = vsel %vm549_vm10, %v3047_v14, %v1361_v48  ;;  %v1572_v14 = vld [vmem:[%s3924_s2 + $0x2c0] sm:$0xff]  ;;  %1896 = vmatpush.msra.mxu1 %v1624_v59 }
 0x231   :  { %1367 = vst.msk [vmem:[#allocation2 + $0x11] sm:$0x1] %vm3128_vm11, %v1365_v45  ;;  %1840 = vmatpush.msrb.mxu2 %v1572_v14  ;;  %1881 = vmatpush.msra.mxu0 %v1603_v13  ;;  %v1616_v48 = vld [vmem:[%s3924_s2 + $0x420] sm:$0xff]  ;;  %v1642_v45 = vld [vmem:[%s3924_s2 + $0x4f0] sm:$0xff]  ;;  %v1613_v14 = vld [vmem:[%s3924_s2 + $0x408] sm:$0xff] }
 0x232   :  { %1897 = vmatpush.msra.mxu1 %v1623_v20  ;;  %1762 = vmatpush.msrb.mxu3 %v1506_v19  ;;  %v1639_v13 = vld [vmem:[%s3924_s2 + $0x4d8] sm:$0xff] }
 0x233   :  { %1841 = vmatpush.msrb.mxu2 %v1571_v52  ;;  %1882 = vmatpush.msra.mxu0 %v1602_v3  ;;  %v1612_v52 = vld [vmem:[%s3924_s2 + $0x400] sm:$0xff] }
 0x234   :  { %1898 = vmatpush.msra.mxu1 %v1622_v49  ;;  %v1636_v3 = vld [vmem:[%s3924_s2 + $0x4c0] sm:$0xff] }
 0x235   :  { %1842 = vmatpush.msrb.mxu2 %v1570_v54  ;;  %1883 = vmatpush.msra.mxu0 %v1601_v44  ;;  %v1637_v54 = vld [vmem:[%s3924_s2 + $0x4c8] sm:$0xff] }
 0x236   :  { %1899 = vmatpush.msra.mxu1 %v1621_v38  ;;  %v1634_v38 = vld [vmem:[%s3924_s2 + $0x4b0] sm:$0xff] }
 0x237   :  { %v1301_v28 = vpop.permute.xlu0 %1300  ;;  %1843 = vmatpush.msrb.mxu2 %v1569_v0 }
 0x238   :  { %v1305_v6 = vsel %vm549_vm10, %v2992_v50, %v1301_v28  ;;  %v1403_v37 = vpop.permute.xlu2 %1402  ;;  %v1505_v50 = vld [vmem:[%s3924_s2 + $0xa8] sm:$0xff]  ;;  %1900 = vmatpush.msra.mxu1 %v1620_v51 }
 0x239   :  { %1311 = vst.msk [vmem:[#allocation2 + $0xd] sm:$0x1] %vm3128_vm11, %v1305_v6  ;;  %v1407_v42 = vsel %vm549_vm10, %v3092_v35, %v1403_v37  ;;  %1763 = vmatpush.msrb.mxu3 %v1505_v50  ;;  %v1600_v35 = vld [vmem:[%s3924_s2 + $0x3a0] sm:$0xff]  ;;  %1844 = vmatpush.msrb.mxu2 %v1568_v29 }
 0x23a   :  { %1409 = vst.msk [vmem:[#allocation2 + $0x14] sm:$0x1] %vm3128_vm11, %v1407_v42  ;;  %1884 = vmatpush.msra.mxu0 %v1600_v35  ;;  %1901 = vmatpush.msra.mxu1 %v1619_v31  ;;  %v1632_v42 = vld [vmem:[%s3924_s2 + $0x4a0] sm:$0xff] }
 0x23b   :  { %1764 = vmatpush.msrb.mxu3 %v1504_v56  ;;  %1845 = vmatpush.msrb.mxu2 %v1567_v12  ;;  %v1630_v56 = vld [vmem:[%s3924_s2 + $0x490] sm:$0xff] }
 0x23c   :  { %1885 = vmatpush.msra.mxu0 %v1599_v17  ;;  %1902 = vmatpush.msra.mxu1 %v1618_v43  ;;  %v1675_v17 = vld [vmem:[%s3924_s2 + $0x5f8] sm:$0xff] }
 0x23d   :  { %1765 = vmatpush.msrb.mxu3 %v1503_v25  ;;  %1846 = vmatpush.msrb.mxu2 %v1566_v1  ;;  %v1531_v25 = vld [vmem:[%s3924_s2 + $0x178] sm:$0xff] }
 0x23e   :  { %1886 = vmatpush.msra.mxu0 %v1598_v32  ;;  %1903 = vmatpush.msra.mxu1 %v1617_v58  ;;  %v1628_v58 = vld [vmem:[%s3924_s2 + $0x480] sm:$0xff] }
 0x23f   :  { %v1333_v33 = vpop.permute.xlu1 %1332  ;;  %1766 = vmatpush.msrb.mxu3 %v1502_v21  ;;  %1847 = vmatpush.msrb.mxu2 %v1565_v5  ;;  %v1691_v5 = vld [vmem:[%s3924_s2 + $0x678] sm:$0xff] }
 0x240   :  { %v1337_v24 = vsel %vm549_vm10, %v3017_v46, %v1333_v33  ;;  %v1429_v2 = vpop.permute.xlu2 %1428  ;;  %v1347_v26 = vpop.permute.xlu0 %1346  ;;  %1887 = vmatpush.msra.mxu0 %v1597_v30  ;;  %1904 = vmatpush.msra.mxu1 %v1616_v48  ;;  %v1530_v33 = vld [vmem:[%s3924_s2 + $0x170] sm:$0xff]  ;;  %v1528_v30 = vld [vmem:[%s3924_s2 + $0x160] sm:$0xff] }
 0x241   :  { %1339 = vst.msk [vmem:[#allocation2 + $0xf] sm:$0x1] %vm3128_vm11, %v1337_v24  ;;  %v1434_v46 = vsel %vm549_vm10, %v3116_v11, %v1429_v2  ;;  %v1351_v39 = vsel %vm549_vm10, %v3025_v57, %v1347_v26  ;;  %1767 = vmatpush.msrb.mxu3 %v1501_v23  ;;  %v1500_v11 = vld [vmem:[%s3924_s2 + $0x80] sm:$0xff]  ;;  %1848 = vmatpush.msrb.mxu2 %v1564_v55  ;;  %v1529_v24 = vld [vmem:[%s3924_s2 + $0x168] sm:$0xff]  ;;  %v1690_v2 = vld [vmem:[%s3924_s2 + $0x670] sm:$0xff] }
 0x242   :  { %1436 = vst.msk [vmem:[#allocation2 + $0x9] sm:$0x1] %vm3128_vm11, %v1434_v46  ;;  %v1596_v57 = vld [vmem:[%s3924_s2 + $0x380] sm:$0xff]  ;;  %1905 = vmatpush.msra.mxu1 %v1615_v22  ;;  %v1673_v26 = vld [vmem:[%s3924_s2 + $0x5e8] sm:$0xff] }
 0x243   :  { %1353 = vst.msk [vmem:[#allocation2 + $0x10] sm:$0x1] %vm3128_vm11, %v1351_v39  ;;  %1768 = vmatpush.msrb.mxu3 %v1500_v11  ;;  %1888 = vmatpush.msra.mxu0 %v1596_v57  ;;  %v1672_v46 = vld [vmem:[%s3924_s2 + $0x5e0] sm:$0xff]  ;;  %v1689_v39 = vld [vmem:[%s3924_s2 + $0x668] sm:$0xff]  ;;  %v1527_v57 = vld [vmem:[%s3924_s2 + $0x158] sm:$0xff] }
 0x244   :  { %1913 = vmatpush.msra.mxu2 %v1643_v60  ;;  %1906 = vmatpush.msra.mxu1 %v1614_v8 }
 0x246   :  { %1914 = vmatpush.msra.mxu2 %v1642_v45  ;;  %1907 = vmatpush.msra.mxu1 %v1613_v14  ;;  %v1688_v14 = vld [vmem:[%s3924_s2 + $0x660] sm:$0xff] }
 0x248   :  { %v1375_v59 = vpop.permute.xlu1 %1374  ;;  %v1445_v7 = vpop.permute.xlu2 %1444  ;;  %1915 = vmatpush.msra.mxu2 %v1641_v40  ;;  %1908 = vmatpush.msra.mxu1 %v1612_v52  ;;  %v1669_v52 = vld [vmem:[%s3924_s2 + $0x5c8] sm:$0xff] }
 0x249   :  { %v1379_v20 = vsel %vm549_vm10, %v3056_v36, %v1375_v59  ;;  %v1449_v53 = vsel %vm549_vm10, %v3146_v47, %v1445_v7  ;;  %v1638_v36 = vld [vmem:[%s3924_s2 + $0x4d0] sm:$0xff]  ;;  %v1687_v7 = vld [vmem:[%s3924_s2 + $0x658] sm:$0xff] }
 0x24a   :  { %1381 = vst.msk [vmem:[#allocation2 + $0x12] sm:$0x1] %vm3128_vm11, %v1379_v20  ;;  %1916 = vmatpush.msra.mxu2 %v1640_v62  ;;  %v1670_v59 = vld [vmem:[%s3924_s2 + $0x5d0] sm:$0xff]  ;;  %v1525_v62 = vld [vmem:[%s3924_s2 + $0x148] sm:$0xff] }
 0x24b   :  { %1451 = vst.msk [vmem:[#allocation2 + $0x17] sm:$0x1] %vm3128_vm11, %v1449_v53  ;;  %v1686_v20 = vld [vmem:[%s3924_s2 + $0x650] sm:$0xff] }
 0x24c   :  { %1917 = vmatpush.msra.mxu2 %v1639_v13  ;;  %v1524_v13 = vld [vmem:[%s3924_s2 + $0x140] sm:$0xff] }
 0x24e   :  { %1918 = vmatpush.msra.mxu2 %v1638_v36 }
 0x24f   :  { %v1389_v47 = vpop.permute.xlu0 %1388 }
 0x250   :  { %v1393_v49 = vsel %vm549_vm10, %v3083_v34, %v1389_v47  ;;  %v1401_v28 = vpop.permute.xlu1 %1400  ;;  %v1471_v19 = vpop.permute.xlu2 %1470  ;;  %1919 = vmatpush.msra.mxu2 %v1637_v54  ;;  %v1635_v34 = vld [vmem:[%s3924_s2 + $0x4b8] sm:$0xff]  ;;  %v1668_v47 = vld [vmem:[%s3924_s2 + $0x5c0] sm:$0xff]  ;;  %v1685_v54 = vld [vmem:[%s3924_s2 + $0x648] sm:$0xff] }
 0x251   :  { %1395 = vst.msk [vmem:[#allocation2 + $0x13] sm:$0x1] %vm3128_vm11, %v1393_v49  ;;  %v1406_v6 = vsel %vm549_vm10, %v3079_v27, %v1401_v28  ;;  %v1476_v0 = vsel %vm549_vm10, %v3162_v15, %v1471_v19  ;;  %v1633_v15 = vld [vmem:[%s3924_s2 + $0x4a8] sm:$0xff]  ;;  %v1523_v49 = vld [vmem:[%s3924_s2 + $0x138] sm:$0xff]  ;;  %v1684_v28 = vld [vmem:[%s3924_s2 + $0x640] sm:$0xff] }
 0x252   :  { %1408 = vst.msk [vmem:[#allocation2 + $0x7] sm:$0x1] %vm3128_vm11, %v1406_v6  ;;  %1920 = vmatpush.msra.mxu2 %v1636_v3  ;;  %v1666_v19 = vld [vmem:[%s3924_s2 + $0x5b0] sm:$0xff]  ;;  %v1683_v3 = vld [vmem:[%s3924_s2 + $0x638] sm:$0xff]  ;;  %v1521_v6 = vld [vmem:[%s3924_s2 + $0x128] sm:$0xff] }
 0x253   :  { %1478 = vst.msk [vmem:[#allocation2 + $0xc] sm:$0x1] %vm3128_vm11, %v1476_v0  ;;  %v1665_v0 = vld [vmem:[%s3924_s2 + $0x5a8] sm:$0xff] }
 0x254   :  { %1921 = vmatpush.msra.mxu2 %v1635_v34  ;;  %v1682_v34 = vld [vmem:[%s3924_s2 + $0x630] sm:$0xff] }
 0x256   :  { %1922 = vmatpush.msra.mxu2 %v1634_v38  ;;  %v1520_v38 = vld [vmem:[%s3924_s2 + $0x120] sm:$0xff] }
 0x257   :  { %v1415_v27 = vpop.permute.xlu0 %1414 }
 0x258   :  { %v1482_v37 = vld [vmem:[#allocation2 + $0xd] sm:$0xff]  ;;  %v1420_v50 = vsel %vm549_vm10, %v3109_v4, %v1415_v27  ;;  %v1443_v44 = vpop.permute.xlu1 %1442  ;;  %1923 = vmatpush.msra.mxu2 %v1633_v15  ;;  %v1664_v15 = vld [vmem:[%s3924_s2 + $0x5a0] sm:$0xff] }
 0x259   :  { %1699 = vst [vmem:[#allocation1 + $0x1] ss:$9 sm:$0xff] %v1482_v37  ;;  %v1480_v29 = vld [vmem:[#allocation2] sm:$0xff]  ;;  %v1448_v51 = vsel %vm549_vm10, %v3113_v18, %v1443_v44  ;;  %v1631_v4 = vld [vmem:[%s3924_s2 + $0x498] sm:$0xff] }
 0x25a   :  { %1422 = vst.msk [vmem:[#allocation2 + $0x8] sm:$0x1] %vm3128_vm11, %v1420_v50  ;;  %1924 = vmatpush.msra.mxu2 %v1632_v42  ;;  %v1629_v18 = vld [vmem:[%s3924_s2 + $0x488] sm:$0xff]  ;;  %v1519_v50 = vld [vmem:[%s3924_s2 + $0x118] sm:$0xff]  ;;  %v1680_v42 = vld [vmem:[%s3924_s2 + $0x620] sm:$0xff] }
 0x25b   :  { %1697 = vst [vmem:[#allocation1] ss:$9 sm:$0xff] %v1480_v29  ;;  %v1681_v37 = vld [vmem:[%s3924_s2 + $0x628] sm:$0xff]  ;;  %v1663_v44 = vld [vmem:[%s3924_s2 + $0x598] sm:$0xff]  ;;  %v1518_v29 = vld [vmem:[%s3924_s2 + $0x110] sm:$0xff] }
 0x25c   :  { %1450 = vst.msk [vmem:[#allocation2 + $0xa] sm:$0x1] %vm3128_vm11, %v1448_v51  ;;  %1925 = vmatpush.msra.mxu2 %v1631_v4  ;;  %v1662_v51 = vld [vmem:[%s3924_s2 + $0x590] sm:$0xff]  ;;  %v1679_v4 = vld [vmem:[%s3924_s2 + $0x618] sm:$0xff] }
 0x25e   :  { %1926 = vmatpush.msra.mxu2 %v1630_v56  ;;  %v1517_v56 = vld [vmem:[%s3924_s2 + $0x108] sm:$0xff] }
 0x25f   :  { %v1457_v35 = vpop.permute.xlu0 %1456 }
 0x260   :  { %v1462_v12 = vsel %vm549_vm10, %v3136_v9, %v1457_v35  ;;  %v1417_v31 = vpop.permute.xlu1 %1416  ;;  %1927 = vmatpush.msra.mxu2 %v1629_v18  ;;  %v1661_v35 = vld [vmem:[%s3924_s2 + $0x588] sm:$0xff]  ;;  %v1516_v18 = vld [vmem:[%s3924_s2 + $0x100] sm:$0xff] }
 0x261   :  { %1464 = vst.msk [vmem:[#allocation2 + $0xb] sm:$0x1] %vm3128_vm11, %v1462_v12  ;;  %v1421_v1 = vsel %vm549_vm10, %v3144_v10, %v1417_v31  ;;  %v1674_v10 = vld [vmem:[%s3924_s2 + $0x5f0] sm:$0xff] }
 0x262   :  { %v1700_v43 = vld [vmem:[#allocation1] sm:$0xff]  ;;  %1423 = vst.msk [vmem:[#allocation2 + $0x15] sm:$0x1] %vm3128_vm11, %v1421_v1  ;;  %v1705_v9 = vld [vmem:[#allocation1 + $0x2d] sm:$0xff]  ;;  %1928 = vmatpush.msra.mxu2 %v1628_v58  ;;  %v3690_v8 = vld [vmem:[#allocation1 + $0x36] sm:$0xff] }
 0x263   :  { %v1703_v21 = vld [vmem:[#allocation1 + $0x1b] sm:$0xff]  ;;  %v1704_v32 = vld [vmem:[#allocation1 + $0x24] sm:$0xff]  ;;  %1749 = vmatmul.f32.vlgmr.msra.gmra.mxu3 %v1700_v43  ;;  %1849 = vmatmul.f32.vlgmr.msrb.gmra.mxu2 %v1705_v9  ;;  %v3688_v45 = vld [vmem:[#allocation1 + $0x12] sm:$0xff] }
 0x264   :  { %1809 = vmatmul.f32.vlgmr.msrb.gmra.mxu0 %v1703_v21  ;;  %1773 = vmatpush.msra.mxu3 %v1531_v25  ;;  %v1701_v11 = vld [vmem:[#allocation1 + $0x9] sm:$0xff]  ;;  %v1707_v22 = vld [vmem:[#allocation1 + $0x3f] sm:$0xff] }
 0x265   :  { %1829 = vmatmul.f32.vlgmr.msrb.gmra.mxu1 %v1704_v32  ;;  %1953 = vmatpush.msrb.mxu0 %v1675_v17  ;;  %v1660_v25 = vld [vmem:[%s3924_s2 + $0x580] sm:$0xff]  ;;  %v1595_v17 = vld [vmem:[%s3924_s2 + $0x378] sm:$0xff]  ;;  %v1678_v43 = vld [vmem:[%s3924_s2 + $0x610] sm:$0xff] }
 0x266   :  { %1774 = vmatpush.msra.mxu3 %v1530_v33  ;;  %1973 = vmatpush.msrb.mxu1 %v1691_v5  ;;  %v1594_v21 = vld [vmem:[%s3924_s2 + $0x370] sm:$0xff]  ;;  %v1677_v32 = vld [vmem:[%s3924_s2 + $0x608] sm:$0xff]  ;;  %v1676_v33 = vld [vmem:[%s3924_s2 + $0x600] sm:$0xff] }
 0x267   :  { %1954 = vmatpush.msrb.mxu0 %v1674_v10  ;;  %v1431_v23 = vpop.permute.xlu0 %1430  ;;  %v1593_v9 = vld [vmem:[%s3924_s2 + $0x368] sm:$0xff]  ;;  %v1592_v5 = vld [vmem:[%s3924_s2 + $0x360] sm:$0xff]  ;;  %v1591_v58 = vld [vmem:[%s3924_s2 + $0x358] sm:$0xff] }
 0x268   :  { %v1481_v55 = vld [vmem:[#allocation2 + $0x8] sm:$0x1f]  ;;  %1775 = vmatpush.msra.mxu3 %v1529_v24  ;;  %v1435_v48 = vsel %vm549_vm10, %v3160_v41, %v1431_v23  ;;  %1974 = vmatpush.msrb.mxu1 %v1690_v2  ;;  %v1459_v60 = vpop.permute.xlu1 %1458  ;;  %v1671_v41 = vld [vmem:[%s3924_s2 + $0x5d8] sm:$0xff]  ;;  %v1589_v2 = vld [vmem:[%s3924_s2 + $0x348] sm:$0xff] }
 0x269   :  { %1955 = vmatpush.msrb.mxu0 %v1673_v26  ;;  %1437 = vst.msk [vmem:[#allocation2 + $0x16] sm:$0x1] %vm3128_vm11, %v1435_v48  ;;  %v1463_v40 = vsel %vm549_vm10, %v3164_v63, %v1459_v60  ;;  %v1526_v63 = vld [vmem:[%s3924_s2 + $0x150] sm:$0xff]  ;;  %v1588_v26 = vld [vmem:[%s3924_s2 + $0x340] sm:$0xff]  ;;  %v1587_v23 = vld [vmem:[%s3924_s2 + $0x338] sm:$0xff] }
 0x26a   :  { %1776 = vmatpush.msra.mxu3 %v1528_v30  ;;  %1975 = vmatpush.msrb.mxu1 %v1689_v39  ;;  %1708 = vst [vmem:[#allocation1] ss:$9 sm:$0xff] %v1481_v55  ;;  %v1590_v24 = vld [vmem:[%s3924_s2 + $0x350] sm:$0xff]  ;;  %v1584_v39 = vld [vmem:[%s3924_s2 + $0x320] sm:$0xff]  ;;  %v1583_v55 = vld [vmem:[%s3924_s2 + $0x318] sm:$0xff] }
 0x26b   :  { %1465 = vst.msk [vmem:[#allocation2 + $0x18] sm:$0x1] %vm3128_vm11, %v1463_v40  ;;  %1956 = vmatpush.msrb.mxu0 %v1672_v46  ;;  %1769 = vmatmul.f32.vlgmr.msrb.gmra.mxu3 %v1701_v11  ;;  %v1586_v30 = vld [vmem:[%s3924_s2 + $0x330] sm:$0xff]  ;;  %v1585_v46 = vld [vmem:[%s3924_s2 + $0x328] sm:$0xff]  ;;  %v1659_v60 = vld [vmem:[%s3924_s2 + $0x578] sm:$0xff] }
 0x26c   :  { %1777 = vmatpush.msra.mxu3 %v1527_v57  ;;  %1889 = vmatmul.f32.vlgmr.msra.gmra.mxu0 %v1707_v22  ;;  %v1582_v48 = vld [vmem:[%s3924_s2 + $0x310] sm:$0xff]  ;;  %v1581_v11 = vld [vmem:[%s3924_s2 + $0x308] sm:$0xff]  ;;  %v1580_v57 = vld [vmem:[%s3924_s2 + $0x300] sm:$0xff] }
 0x26d   :  { %1957 = vmatpush.msrb.mxu0 %v1671_v41  ;;  %1976 = vmatpush.msrb.mxu1 %v1688_v14  ;;  %v1658_v22 = vld [vmem:[%s3924_s2 + $0x570] sm:$0xff]  ;;  %v1656_v40 = vld [vmem:[%s3924_s2 + $0x560] sm:$0xff]  ;;  %v1655_v41 = vld [vmem:[%s3924_s2 + $0x558] sm:$0xff] }
 0x26e   :  { %1778 = vmatpush.msra.mxu3 %v1526_v63  ;;  %v1653_v14 = vld [vmem:[%s3924_s2 + $0x548] sm:$0xff]  ;;  %v1652_v63 = vld [vmem:[%s3924_s2 + $0x540] sm:$0xff] }
 0x26f   :  { %1958 = vmatpush.msrb.mxu0 %v1670_v59  ;;  %v1473_v53 = vpop.permute.xlu0 %1472  ;;  %1977 = vmatpush.msrb.mxu1 %v1687_v7  ;;  %v1651_v59 = vld [vmem:[%s3924_s2 + $0x538] sm:$0xff]  ;;  %v1650_v7 = vld [vmem:[%s3924_s2 + $0x530] sm:$0xff] }
 0x270   :  { %1779 = vmatpush.msra.mxu3 %v1525_v62  ;;  %v1477_v36 = vsel %vm549_vm10, %v3172_v61, %v1473_v53  ;;  %v1667_v61 = vld [vmem:[%s3924_s2 + $0x5b8] sm:$0xff]  ;;  %v1649_v62 = vld [vmem:[%s3924_s2 + $0x528] sm:$0xff]  ;;  %v1646_v53 = vld [vmem:[%s3924_s2 + $0x510] sm:$0xff] }
 0x271   :  { %1959 = vmatpush.msrb.mxu0 %v1669_v52  ;;  %1479 = vst.msk [vmem:[#allocation2 + $0x19] sm:$0x1] %vm3128_vm11, %v1477_v36  ;;  %1978 = vmatpush.msrb.mxu1 %v1686_v20  ;;  %v1648_v52 = vld [vmem:[%s3924_s2 + $0x520] sm:$0xff]  ;;  %v1647_v20 = vld [vmem:[%s3924_s2 + $0x518] sm:$0xff] }
 0x272   :  { %1780 = vmatpush.msra.mxu3 %v1524_v13  ;;  %v1645_v13 = vld [vmem:[%s3924_s2 + $0x508] sm:$0xff]  ;;  %v1644_v36 = vld [vmem:[%s3924_s2 + $0x500] sm:$0xff] }
 0x273   :  { %1960 = vmatpush.msrb.mxu0 %v1668_v47  ;;  %1979 = vmatpush.msrb.mxu1 %v1685_v54 }
 0x274   :  { %1781 = vmatpush.msra.mxu3 %v1523_v49  ;;  %v1692_v49 = vld [vmem:[%s3922_s3 + $0x5] sm:$0x1] }
 0x275   :  { %1961 = vmatpush.msrb.mxu0 %v1667_v61  ;;  %1980 = vmatpush.msrb.mxu1 %v1684_v28  ;;  %v1729_v61 = vrot.slane %v1692_v49, 7 }
 0x276   :  { %1782 = vmatpush.msra.mxu3 %v1522_v16 }
 0x277   :  { %1962 = vmatpush.msrb.mxu0 %v1666_v19  ;;  %1981 = vmatpush.msrb.mxu1 %v1683_v3  ;;  %v1731_v16 = vsel %vm1730_vm12, %v1729_v61, %v1692_v49 }
 0x278   :  { %v1483_v27 = vld [vmem:[#allocation2 + $0x15] sm:$0x1f]  ;;  %1783 = vmatpush.msra.mxu3 %v1521_v6 }
 0x279   :  { %1963 = vmatpush.msrb.mxu0 %v1665_v0  ;;  %1982 = vmatpush.msrb.mxu1 %v1682_v34  ;;  %1709 = vst [vmem:[#allocation1 + $0x1] ss:$9 sm:$0xff] %v1483_v27 }
 0x27a   :  { %1784 = vmatpush.msra.mxu3 %v1520_v38 }
 0x27b   :  { %1964 = vmatpush.msrb.mxu0 %v1664_v15  ;;  %1983 = vmatpush.msrb.mxu1 %v1681_v37 }
 0x27c   :  { %1785 = vmatpush.msra.mxu3 %v1519_v50 }
 0x27d   :  { %1965 = vmatpush.msrb.mxu0 %v1663_v44  ;;  %1984 = vmatpush.msrb.mxu1 %v1680_v42 }
 0x27e   :  { %1786 = vmatpush.msra.mxu3 %v1518_v29 }
 0x27f   :  { %1966 = vmatpush.msrb.mxu0 %v1662_v51  ;;  %1985 = vmatpush.msrb.mxu1 %v1679_v4 }
 0x280   :  { %1787 = vmatpush.msra.mxu3 %v1517_v56  ;;  %v1710_v12 = vld [vmem:[#allocation1] sm:$0xff]  ;;  %v1711_v31 = vld [vmem:[#allocation1 + $0x9] sm:$0xff]  ;;  %v1712_v47 = vld [vmem:[#allocation1 + $0x12] sm:$0xff] }
 0x281   :  { %1967 = vmatpush.msrb.mxu0 %v1661_v35  ;;  %1909 = vmatmul.f32.vlgmr.msra.gmra.mxu1 %v1710_v12  ;;  %v1713_v1 = vld [vmem:[#allocation1 + $0x1b] sm:$0xff]  ;;  %v1714_v10 = vld [vmem:[#allocation1 + $0x24] sm:$0xff] }
 0x282   :  { %1788 = vmatpush.msra.mxu3 %v1516_v18  ;;  %1929 = vmatmul.f32.vlgmr.msra.gmra.mxu2 %v1711_v31 }
 0x283   :  { %1968 = vmatpush.msrb.mxu0 %v1660_v25  ;;  %1789 = vmatmul.f32.vlgmr.msra.gmra.mxu3 %v3688_v45  ;;  %v1657_v45 = vld [vmem:[%s3924_s2 + $0x568] sm:$0xff] }
 0x284   :  { %1853 = vmatpush.msrb.mxu3 %v1595_v17  ;;  %1969 = vmatmul.f32.vlgmr.msrb.gmra.mxu0 %v1713_v1 }
 0x285   :  { %1986 = vmatpush.msrb.mxu1 %v1678_v43 }
 0x286   :  { %1854 = vmatpush.msrb.mxu3 %v1594_v21  ;;  %v1998_v21 = vld [vmem:[%s3922_s3 + $0x6] sm:$0x1] }
 0x287   :  { %1987 = vmatpush.msrb.mxu1 %v1677_v32 }
 0x288   :  { %1855 = vmatpush.msrb.mxu3 %v1593_v9 }
 0x289   :  { %1988 = vmatpush.msrb.mxu1 %v1676_v33 }
 0x28a   :  { %1856 = vmatpush.msrb.mxu3 %v1592_v5  ;;  %1989 = vmatmul.f32.vlgmr.msrb.gmra.mxu1 %v1714_v10 }
 0x28c   :  { %1857 = vmatpush.msrb.mxu3 %v1591_v58 }
 0x28e   :  { %1858 = vmatpush.msrb.mxu3 %v1590_v24 }
 0x290   :  { %1859 = vmatpush.msrb.mxu3 %v1589_v2  ;;  %v2008_v2 = vld [vmem:[%s3922_s3 + $0x7] sm:$0x1] }
 0x292   :  { %1860 = vmatpush.msrb.mxu3 %v1588_v26 }
 0x294   :  { %1861 = vmatpush.msrb.mxu3 %v1587_v23 }
 0x296   :  { %1862 = vmatpush.msrb.mxu3 %v1586_v30 }
 0x298   :  { %1863 = vmatpush.msrb.mxu3 %v1585_v46 }
 0x29a   :  { %1864 = vmatpush.msrb.mxu3 %v1584_v39 }
 0x29c   :  { %1865 = vmatpush.msrb.mxu3 %v1583_v55 }
 0x29e   :  { %1866 = vmatpush.msrb.mxu3 %v1582_v48 }
 0x2a0   :  { %1867 = vmatpush.msrb.mxu3 %v1581_v11 }
 0x2a2   :  { %1868 = vmatpush.msrb.mxu3 %v1580_v57 }
 0x2a3   :  { %1869 = vmatmul.f32.vlgmr.msrb.gmra.mxu3 %v3690_v8  ;;  %v1654_v8 = vld [vmem:[%s3924_s2 + $0x550] sm:$0xff] }
 0x2a4   :  { %1933 = vmatpush.msra.mxu3 %v1659_v60 }
 0x2a6   :  { %1934 = vmatpush.msra.mxu3 %v1658_v22 }
 0x2a8   :  { %1935 = vmatpush.msra.mxu3 %v1657_v45 }
 0x2aa   :  { %1936 = vmatpush.msra.mxu3 %v1656_v40 }
 0x2ac   :  { %1937 = vmatpush.msra.mxu3 %v1655_v41 }
 0x2ae   :  { %1938 = vmatpush.msra.mxu3 %v1654_v8 }
 0x2b0   :  { %1939 = vmatpush.msra.mxu3 %v1653_v14 }
 0x2b2   :  { %1940 = vmatpush.msra.mxu3 %v1652_v63 }
 0x2b4   :  { %1941 = vmatpush.msra.mxu3 %v1651_v59 }
 0x2b6   :  { %1942 = vmatpush.msra.mxu3 %v1650_v7 }
 0x2b8   :  { %1943 = vmatpush.msra.mxu3 %v1649_v62 }
 0x2ba   :  { %1944 = vmatpush.msra.mxu3 %v1648_v52 }
 0x2bc   :  { %1945 = vmatpush.msra.mxu3 %v1647_v20 }
 0x2be   :  { %1946 = vmatpush.msra.mxu3 %v1646_v53 }
 0x2c0   :  { %1947 = vmatpush.msra.mxu3 %v1645_v13 }
 0x2c2   :  { %1948 = vmatpush.msra.mxu3 %v1644_v36 }
 0x2c3   :  { %1949 = vmatmul.f32.vlgmr.msra.gmra.mxu3 %v1712_v47 }
 0x2e1   :  { %v1810_v34 = vpop.f32.mrf.mxu0 }
 0x2e2   :  { %v1830_v27 = vpop.f32.mrf.mxu1 }
 0x2e6   :  { %v1750_v54 = vpop.f32.mrf.mxu3  ;;  %v1850_v37 = vpop.f32.mrf.mxu2 }
 0x2e7   :  { %v1751_v19 = vadd.f32 %v1750_v54, %v1731_v16 }
 0x2e9   :  { %v1890_v29 = vpop.f32.mrf.mxu0 }
 0x2ee   :  { %v1770_v28 = vpop.f32.mrf.mxu3 }
 0x2ef   :  { %v1771_v6 = vadd.f32 %v1770_v28, %v1751_v19 }
 0x2fe   :  { %v1910_v4 = vpop.f32.mrf.mxu1 }
 0x301   :  { %v1970_v25 = vpop.f32.mrf.mxu0 }
 0x305   :  { %v1930_v35 = vpop.f32.mrf.mxu2 }
 0x306   :  { %v1790_v3 = vpop.f32.mrf.mxu3 }
 0x307   :  { %v1791_v0 = vadd.f32 %v1790_v3, %v1771_v6  ;;  %v1990_v1 = vpop.f32.mrf.mxu1 }
 0x309   :  { %v1811_v38 = vadd.f32 %v1810_v34, %v1791_v0 }
 0x30b   :  { %v1831_v15 = vadd.f32 %v1830_v27, %v1811_v38 }
 0x30d   :  { %v1851_v44 = vadd.f32 %v1850_v37, %v1831_v15 }
 0x326   :  { %v1870_v50 = vpop.f32.mrf.mxu3 }
 0x327   :  { %v1871_v42 = vadd.f32 %v1870_v50, %v1851_v44 }
 0x329   :  { %v1891_v51 = vadd.f32 %v1890_v29, %v1871_v42 }
 0x32b   :  { %v1911_v56 = vadd.f32 %v1910_v4, %v1891_v51 }
 0x32d   :  { %v1931_v18 = vadd.f32 %v1930_v35, %v1911_v56 }
 0x346   :  { %v1950_v12 = vpop.f32.mrf.mxu3 }
 0x347   :  { %v1951_v31 = vadd.f32 %v1950_v12, %v1931_v18 }
 0x349   :  { %v1971_v17 = vadd.f32 %v1970_v25, %v1951_v31 }
 0x34b   :  { %v1991_v43 = vadd.f32 %v1990_v1, %v1971_v17 }
 0x34d   :  { %v1996_v32 = vmax.f32 %v1991_v43, 0.0  ;;  %v1994_v9 = vrot.slane %v1991_v43, 1 }
 0x34f   :  { %v1999_v33 = vmul.f32 %v1998_v21, %v1996_v32  ;;  %v1997_v5 = vmax.f32 %v1994_v9, 0.0 }
 0x351   :  { %v2002_v10 = vsel %vm2001_vm13, %v1999_v33, 0.0  ;;  %v2000_v58 = vmul.f32 %v1998_v21, %v1997_v5 }
 0x352   :  { %2003 = vadd.xlane.f32.xlu1 %v2002_v10 }
 0x353   :  { %v2005_v24 = vsel %vm2001_vm13, %v2000_v58, 0.0 }
 0x354   :  { %2006 = vadd.xlane.f32.xlu2 %v2005_v24 }
 0x3c5   :  { %v2004_v26 = vpop.xlane.xlu1 %2003 }
 0x3c6   :  { %v2009_v23 = vadd.f32 %v2008_v2, %v2004_v26 }
 0x3c7   :  { %v2007_v30 = vpop.xlane.xlu2 %2006 }
 0x3c8   :  { %2012 = vst.msk [vmem:[%s3925_s4] sm:$0x1] %vm2011_vm14, %v2009_v23  ;;  %v2010_v46 = vadd.f32 %v2008_v2, %v2007_v30 }
 0x3ca   :  { %2013 = vst.msk [vmem:[%s3925_s4 + $0x1] sm:$0x1] %vm2011_vm14, %v2010_v46 }

</bundles_post_ra>
